<compile_context>
chip_gen: v6e
topology: v6e:2x2x1
jax: 0.10.0
libtpu: 0.0.40
codegen_flags: <defaults>
</compile_context>

<pallas_src>
import math
from functools import partial

import jax
import jax.numpy as jnp
from jax.experimental import pallas as pl
from jax.experimental.pallas import tpu as pltpu


# ------------------------------ fused kernel --------------------------------

def _encoder_stack_kernel(src_ref, pos_ref, wqkv_ref, bqkv_ref, wo_ref, bo_ref,
                          g1_ref, b1_ref, w1_ref, bias1_ref, w2_ref, bias2_ref,
                          g2_ref, b2_ref, o_ref, *, num_layers, nhead, eps):
    S = src_ref.shape[1]
    D = src_ref.shape[2]
    Dh = D // nhead

    x0 = src_ref[0].astype(jnp.float32)            # (S, D)
    pos = pos_ref[0].astype(jnp.bfloat16)          # (S, D) — only used in matmul

    # Load all weights once; they stay resident for the whole stack.
    wqkv = wqkv_ref[...].astype(jnp.bfloat16)      # (D, 3D)  (Wq pre-scaled)
    bqkv = bqkv_ref[...]                           # (1, 3D)  fp32
    wo = wo_ref[...].astype(jnp.bfloat16)          # (D, D)
    bo = bo_ref[...]                               # (1, D)
    w1 = w1_ref[...].astype(jnp.bfloat16)          # (D, FF)
    bias1 = bias1_ref[...]                         # (1, FF)
    w2 = w2_ref[...].astype(jnp.bfloat16)          # (FF, D)
    bias2 = bias2_ref[...]                         # (1, D)
    g1, b1 = g1_ref[...], b1_ref[...]
    g2, b2 = g2_ref[...], b2_ref[...]

    # pos @ [Wq*scale | Wk] is identical for every layer (cloned params):
    # hoist it out of the layer loop.
    pos_qk = jnp.dot(pos, wqkv[:, :2 * D], preferred_element_type=jnp.float32)

    def layer_norm(h, g, b):
        mu = jnp.mean(h, axis=-1, keepdims=True)
        d = h - mu
        var = jnp.mean(d * d, axis=-1, keepdims=True)
        return d * jax.lax.rsqrt(var + eps) * g + b

    def one_layer(_, x):
        # Fused QKV projection; pos contribution added from the hoisted pos_qk.
        qkv = jnp.dot(x.astype(jnp.bfloat16), wqkv,
                      preferred_element_type=jnp.float32) + bqkv       # (S, 3D)
        q = qkv[:, :D] + pos_qk[:, :D]          # 1/sqrt(Dh) already folded in
        k = qkv[:, D:2 * D] + pos_qk[:, D:]
        v = qkv[:, 2 * D:]

        # Multi-head self-attention with out_proj folded per head (no concat).
        attn = jnp.zeros((S, D), jnp.float32)
        for h in range(nhead):
            sl = slice(h * Dh, (h + 1) * Dh)
            qh = q[:, sl].astype(jnp.bfloat16)
            kh = k[:, sl].astype(jnp.bfloat16)
            vh = v[:, sl].astype(jnp.bfloat16)
            s = jax.lax.dot_general(qh, kh, (((1,), (1,)), ((), ())),
                                    preferred_element_type=jnp.float32)   # (S,S)
            s = s - jnp.max(s, axis=-1, keepdims=True)
            p = jnp.exp(s)
            p = p * pl.reciprocal(jnp.sum(p, axis=-1, keepdims=True),
                                  approx=True)
            oh = jnp.dot(p.astype(jnp.bfloat16), vh,
                         preferred_element_type=jnp.float32)              # (S,Dh)
            attn = attn + jnp.dot(oh.astype(jnp.bfloat16), wo[sl, :],
                                  preferred_element_type=jnp.float32)
        attn = attn + bo

        # src = norm1(src + attn)
        h1 = layer_norm(x + attn, g1, b1)

        # FFN: linear2(relu(linear1(h1)))
        f = jnp.dot(h1.astype(jnp.bfloat16), w1,
                    preferred_element_type=jnp.float32) + bias1
        f = jnp.maximum(f, 0.0)
        f2 = jnp.dot(f.astype(jnp.bfloat16), w2,
                     preferred_element_type=jnp.float32) + bias2

        # src = norm2(h1 + ffn)
        return layer_norm(h1 + f2, g2, b2)

    out = jax.lax.fori_loop(0, num_layers, one_layer, x0, unroll=True)
    o_ref[0] = out.astype(o_ref.dtype)


# -------------------------------- wrapper ------------------------------------

def transformer_encoder(src, pos, params, num_layers, nhead, eps=1e-5):
    """src, pos: (S, B, D) float32.  Returns (S, B, D)."""
    S, B, D = src.shape
    Dh = D // nhead
    scale = 1.0 / math.sqrt(Dh)

    # Batch-major tokens so each grid step owns one contiguous (S, D) slab.
    src_b = jnp.transpose(src, (1, 0, 2))          # (B, S, D)
    pos_b = jnp.transpose(pos, (1, 0, 2))

    # Fold 1/sqrt(Dh) into Wq/bq and fuse Q|K|V into one (D, 3D) weight.
    w_qkv = jnp.concatenate(
        [params["wq"] * scale, params["wk"], params["wv"]], axis=1)
    b_qkv = jnp.concatenate(
        [params["bq"] * scale, params["bk"], params["bv"]]).reshape(1, 3 * D)

    row = lambda v: v.reshape(1, -1)
    weight_args = (w_qkv, b_qkv,
                   params["wo"], row(params["bo"]),
                   row(params["g1"]), row(params["b1"]),
                   params["w1"], row(params["bias1"]),
                   params["w2"], row(params["bias2"]),
                   row(params["g2"]), row(params["b2"]))

    tok_spec = pl.BlockSpec((1, S, D), lambda b: (b, 0, 0))
    full2d = lambda a: pl.BlockSpec(a.shape, lambda b: (0, 0))

    out = pl.pallas_call(
        partial(_encoder_stack_kernel,
                num_layers=num_layers, nhead=nhead, eps=eps),
        out_shape=jax.ShapeDtypeStruct((B, S, D), src.dtype),
        grid=(B,),
        in_specs=[tok_spec, tok_spec] + [full2d(a) for a in weight_args],
        out_specs=tok_spec,
        compiler_params=pltpu.CompilerParams(
            dimension_semantics=("parallel",)),
    )(src_b, pos_b, *weight_args)

    return jnp.transpose(out, (1, 0, 2))           # back to (S, B, D)


# --------------------------- pure-JAX reference ------------------------------

def _ref_encoder(src, pos, p, num_layers, nhead, eps=1e-5):
    S, B, D = src.shape
    Dh = D // nhead
    scale = 1.0 / math.sqrt(Dh)

    def ln(h, g, b):
        mu = h.mean(-1, keepdims=True)
        var = ((h - mu) ** 2).mean(-1, keepdims=True)
        return (h - mu) * jax.lax.rsqrt(var + eps) * g + b

    x = src
    for _ in range(num_layers):
        qk_in = x + pos
        q = (qk_in @ p["wq"] + p["bq"]) * scale
        k = qk_in @ p["wk"] + p["bk"]
        v = x @ p["wv"] + p["bv"]
        heads = lambda t: t.reshape(S, B, nhead, Dh).transpose(1, 2, 0, 3)
        qh, kh, vh = heads(q), heads(k), heads(v)
        s = jnp.einsum("bhqd,bhkd->bhqk", qh, kh)
        a = jax.nn.softmax(s, axis=-1)
        o = jnp.einsum("bhqk,bhkd->bhqd", a, vh)
        o = o.transpose(2, 0, 1, 3).reshape(S, B, D)
        attn = o @ p["wo"] + p["bo"]
        h1 = ln(x + attn, p["g1"], p["b1"])
        f = jnp.maximum(h1 @ p["w1"] + p["bias1"], 0.0)
        f2 = f @ p["w2"] + p["bias2"]
        x = ln(h1 + f2, p["g2"], p["b2"])
    return x


# ----------------------------------- main ------------------------------------

def make_params(key, d_model, dim_ff):
    ks = jax.random.split(key, 8)
    s = 0.02
    return {
        "wq": s * jax.random.normal(ks[0], (d_model, d_model), jnp.float32),
        "wk": s * jax.random.normal(ks[1], (d_model, d_model), jnp.float32),
        "wv": s * jax.random.normal(ks[2], (d_model, d_model), jnp.float32),
        "wo": s * jax.random.normal(ks[3], (d_model, d_model), jnp.float32),
        "bq": jnp.zeros((d_model,), jnp.float32),
        "bk": jnp.zeros((d_model,), jnp.float32),
        "bv": jnp.zeros((d_model,), jnp.float32),
        "bo": jnp.zeros((d_model,), jnp.float32),
        "w1": s * jax.random.normal(ks[4], (d_model, dim_ff), jnp.float32),
        "bias1": jnp.zeros((dim_ff,), jnp.float32),
        "w2": s * jax.random.normal(ks[5], (dim_ff, d_model), jnp.float32),
        "bias2": jnp.zeros((d_model,), jnp.float32),
        "g1": jnp.ones((d_model,), jnp.float32),
        "b1": jnp.zeros((d_model,), jnp.float32),
        "g2": jnp.ones((d_model,), jnp.float32),
        "b2": jnp.zeros((d_model,), jnp.float32),
    }


if __name__ == "__main__":
    S, B, D, H, FF, L = 8, 2, 32, 4, 64, 2   # seq, batch, d_model, heads, ffn, layers

    key = jax.random.PRNGKey(0)
    k_src, k_pos, k_par = jax.random.split(key, 3)
    src = jax.random.normal(k_src, (S, B, D), jnp.float32)
    pos = jax.random.normal(k_pos, (S, B, D), jnp.float32)
    params = make_params(k_par, D, FF)

    out = transformer_encoder(src, pos, params, num_layers=L, nhead=H)
    out = jax.block_until_ready(out)

    assert out.shape == (S, B, D) and out.dtype == jnp.float32
    assert bool(jnp.all(jnp.isfinite(out)))

    # Loose tolerance: kernel uses bf16 MXU operands + approx reciprocal.
    ref = _ref_encoder(src, pos, params, num_layers=L, nhead=H)
    max_err = float(jnp.max(jnp.abs(out - ref)))
    assert max_err < 0.2, f"mismatch vs reference: {max_err}"

    print("KERNEL_OK")
</pallas_src>

<mosaic_0001>
module attributes {stable_mosaic.version = 11 : i64} {
  func.func @_encoder_stack_kernel(%arg0: i32, %arg1: memref<1x8x32xf32, #tpu.memory_space<vmem>>, %arg2: memref<1x8x32xf32, #tpu.memory_space<vmem>>, %arg3: memref<32x96xf32, #tpu.memory_space<vmem>>, %arg4: memref<1x96xf32, #tpu.memory_space<vmem>>, %arg5: memref<32x32xf32, #tpu.memory_space<vmem>>, %arg6: memref<1x32xf32, #tpu.memory_space<vmem>>, %arg7: memref<1x32xf32, #tpu.memory_space<vmem>>, %arg8: memref<1x32xf32, #tpu.memory_space<vmem>>, %arg9: memref<32x64xf32, #tpu.memory_space<vmem>>, %arg10: memref<1x64xf32, #tpu.memory_space<vmem>>, %arg11: memref<64x32xf32, #tpu.memory_space<vmem>>, %arg12: memref<1x32xf32, #tpu.memory_space<vmem>>, %arg13: memref<1x32xf32, #tpu.memory_space<vmem>>, %arg14: memref<1x32xf32, #tpu.memory_space<vmem>>, %arg15: memref<1x8x32xf32, #tpu.memory_space<vmem>>) attributes {dimension_semantics = [#tpu.dimension_semantics<parallel>], iteration_bounds = array<i64: 2>, scalar_prefetch = 0 : i64, scratch_operands = 0 : i64, tpu.core_type = #tpu.core_type<tc>, window_params = [{transform_indices = @transform_0, window_bounds = array<i64: 1, 8, 32>}, {transform_indices = @transform_1, window_bounds = array<i64: 1, 8, 32>}, {pipeline_mode = #tpu.pipeline_mode<synchronous>, transform_indices = @transform_2, window_bounds = array<i64: 32, 96>}, {pipeline_mode = #tpu.pipeline_mode<synchronous>, transform_indices = @transform_3, window_bounds = array<i64: 1, 96>}, {pipeline_mode = #tpu.pipeline_mode<synchronous>, transform_indices = @transform_4, window_bounds = array<i64: 32, 32>}, {pipeline_mode = #tpu.pipeline_mode<synchronous>, transform_indices = @transform_5, window_bounds = array<i64: 1, 32>}, {pipeline_mode = #tpu.pipeline_mode<synchronous>, transform_indices = @transform_6, window_bounds = array<i64: 1, 32>}, {pipeline_mode = #tpu.pipeline_mode<synchronous>, transform_indices = @transform_7, window_bounds = array<i64: 1, 32>}, {pipeline_mode = #tpu.pipeline_mode<synchronous>, transform_indices = @transform_8, window_bounds = array<i64: 32, 64>}, {pipeline_mode = #tpu.pipeline_mode<synchronous>, transform_indices = @transform_9, window_bounds = array<i64: 1, 64>}, {pipeline_mode = #tpu.pipeline_mode<synchronous>, transform_indices = @transform_10, window_bounds = array<i64: 64, 32>}, {pipeline_mode = #tpu.pipeline_mode<synchronous>, transform_indices = @transform_11, window_bounds = array<i64: 1, 32>}, {pipeline_mode = #tpu.pipeline_mode<synchronous>, transform_indices = @transform_12, window_bounds = array<i64: 1, 32>}, {pipeline_mode = #tpu.pipeline_mode<synchronous>, transform_indices = @transform_13, window_bounds = array<i64: 1, 32>}, {transform_indices = @transform_14, window_bounds = array<i64: 1, 8, 32>}]} {
    %c0 = arith.constant 0 : index
    %c0_0 = arith.constant 0 : index
    %c0_1 = arith.constant 0 : index
    %0 = vector.load %arg1[%c0, %c0_0, %c0_1] : memref<1x8x32xf32, #tpu.memory_space<vmem>>, vector<1x8x32xf32>
    %1 = vector.shape_cast %0 : vector<1x8x32xf32> to vector<8x32xf32>
    %c0_2 = arith.constant 0 : index
    %c0_3 = arith.constant 0 : index
    %c0_4 = arith.constant 0 : index
    %2 = vector.load %arg2[%c0_2, %c0_3, %c0_4] : memref<1x8x32xf32, #tpu.memory_space<vmem>>, vector<1x8x32xf32>
    %3 = vector.shape_cast %2 : vector<1x8x32xf32> to vector<8x32xf32>
    %4 = arith.truncf %3 : vector<8x32xf32> to vector<8x32xbf16>
    %c0_5 = arith.constant 0 : index
    %c0_6 = arith.constant 0 : index
    %5 = vector.load %arg3[%c0_5, %c0_6] : memref<32x96xf32, #tpu.memory_space<vmem>>, vector<32x96xf32>
    %6 = arith.truncf %5 : vector<32x96xf32> to vector<32x96xbf16>
    %c0_7 = arith.constant 0 : index
    %c0_8 = arith.constant 0 : index
    %7 = vector.load %arg4[%c0_7, %c0_8] : memref<1x96xf32, #tpu.memory_space<vmem>>, vector<1x96xf32>
    %c0_9 = arith.constant 0 : index
    %c0_10 = arith.constant 0 : index
    %8 = vector.load %arg5[%c0_9, %c0_10] : memref<32x32xf32, #tpu.memory_space<vmem>>, vector<32x32xf32>
    %9 = arith.truncf %8 : vector<32x32xf32> to vector<32x32xbf16>
    %c0_11 = arith.constant 0 : index
    %c0_12 = arith.constant 0 : index
    %10 = vector.load %arg6[%c0_11, %c0_12] : memref<1x32xf32, #tpu.memory_space<vmem>>, vector<1x32xf32>
    %c0_13 = arith.constant 0 : index
    %c0_14 = arith.constant 0 : index
    %11 = vector.load %arg9[%c0_13, %c0_14] : memref<32x64xf32, #tpu.memory_space<vmem>>, vector<32x64xf32>
    %12 = arith.truncf %11 : vector<32x64xf32> to vector<32x64xbf16>
    %c0_15 = arith.constant 0 : index
    %c0_16 = arith.constant 0 : index
    %13 = vector.load %arg10[%c0_15, %c0_16] : memref<1x64xf32, #tpu.memory_space<vmem>>, vector<1x64xf32>
    %c0_17 = arith.constant 0 : index
    %c0_18 = arith.constant 0 : index
    %14 = vector.load %arg11[%c0_17, %c0_18] : memref<64x32xf32, #tpu.memory_space<vmem>>, vector<64x32xf32>
    %15 = arith.truncf %14 : vector<64x32xf32> to vector<64x32xbf16>
    %c0_19 = arith.constant 0 : index
    %c0_20 = arith.constant 0 : index
    %16 = vector.load %arg12[%c0_19, %c0_20] : memref<1x32xf32, #tpu.memory_space<vmem>>, vector<1x32xf32>
    %c0_21 = arith.constant 0 : index
    %c0_22 = arith.constant 0 : index
    %17 = vector.load %arg7[%c0_21, %c0_22] : memref<1x32xf32, #tpu.memory_space<vmem>>, vector<1x32xf32>
    %c0_23 = arith.constant 0 : index
    %c0_24 = arith.constant 0 : index
    %18 = vector.load %arg8[%c0_23, %c0_24] : memref<1x32xf32, #tpu.memory_space<vmem>>, vector<1x32xf32>
    %c0_25 = arith.constant 0 : index
    %c0_26 = arith.constant 0 : index
    %19 = vector.load %arg13[%c0_25, %c0_26] : memref<1x32xf32, #tpu.memory_space<vmem>>, vector<1x32xf32>
    %c0_27 = arith.constant 0 : index
    %c0_28 = arith.constant 0 : index
    %20 = vector.load %arg14[%c0_27, %c0_28] : memref<1x32xf32, #tpu.memory_space<vmem>>, vector<1x32xf32>
    %21 = vector.extract_strided_slice %6 {offsets = [0, 0], sizes = [32, 64], strides = [1, 1]} : vector<32x96xbf16> to vector<32x64xbf16>
    %cst = arith.constant dense<0.000000e+00> : vector<8x64xf32>
    %22 = tpu.matmul %4, %21, %cst {dimension_numbers = #tpu.dot_dimension_numbers<[1], [0], [0], [1], [0, 0, 1, 1], [], []>} : vector<8x32xbf16>, vector<32x64xbf16>, vector<8x64xf32> -> vector<8x64xf32>
    %c0_i32 = arith.constant 0 : i32
    %23 = arith.truncf %1 : vector<8x32xf32> to vector<8x32xbf16>
    %cst_29 = arith.constant dense<0.000000e+00> : vector<8x96xf32>
    %24 = tpu.matmul %23, %6, %cst_29 {dimension_numbers = #tpu.dot_dimension_numbers<[1], [0], [0], [1], [0, 0, 1, 1], [], []>} : vector<8x32xbf16>, vector<32x96xbf16>, vector<8x96xf32> -> vector<8x96xf32>
    %25 = vector.broadcast %7 : vector<1x96xf32> to vector<8x96xf32>
    %26 = arith.addf %24, %25 : vector<8x96xf32>
    %27 = vector.extract_strided_slice %26 {offsets = [0, 0], sizes = [8, 32], strides = [1, 1]} : vector<8x96xf32> to vector<8x32xf32>
    %28 = vector.extract_strided_slice %22 {offsets = [0, 0], sizes = [8, 32], strides = [1, 1]} : vector<8x64xf32> to vector<8x32xf32>
    %29 = arith.addf %27, %28 : vector<8x32xf32>
    %30 = vector.extract_strided_slice %26 {offsets = [0, 32], sizes = [8, 32], strides = [1, 1]} : vector<8x96xf32> to vector<8x32xf32>
    %31 = vector.extract_strided_slice %22 {offsets = [0, 32], sizes = [8, 32], strides = [1, 1]} : vector<8x64xf32> to vector<8x32xf32>
    %32 = arith.addf %30, %31 : vector<8x32xf32>
    %33 = vector.extract_strided_slice %26 {offsets = [0, 64], sizes = [8, 32], strides = [1, 1]} : vector<8x96xf32> to vector<8x32xf32>
    %cst_30 = arith.constant 0.000000e+00 : f32
    %34 = vector.broadcast %cst_30 : f32 to vector<8x32xf32>
    %35 = vector.extract_strided_slice %29 {offsets = [0, 0], sizes = [8, 8], strides = [1, 1]} : vector<8x32xf32> to vector<8x8xf32>
    %36 = arith.truncf %35 : vector<8x8xf32> to vector<8x8xbf16>
    %37 = vector.extract_strided_slice %32 {offsets = [0, 0], sizes = [8, 8], strides = [1, 1]} : vector<8x32xf32> to vector<8x8xf32>
    %38 = arith.truncf %37 : vector<8x8xf32> to vector<8x8xbf16>
    %39 = vector.extract_strided_slice %33 {offsets = [0, 0], sizes = [8, 8], strides = [1, 1]} : vector<8x32xf32> to vector<8x8xf32>
    %40 = arith.truncf %39 : vector<8x8xf32> to vector<8x8xbf16>
    %cst_31 = arith.constant dense<0.000000e+00> : vector<8x8xf32>
    %41 = tpu.matmul %36, %38, %cst_31 {dimension_numbers = #tpu.dot_dimension_numbers<[1], [1], [0], [0], [0, 0, 1, 0], [], []>} : vector<8x8xbf16>, vector<8x8xbf16>, vector<8x8xf32> -> vector<8x8xf32>
    %cst_32 = arith.constant dense<0xFF800000> : vector<8xf32>
    %42 = vector.multi_reduction <maximumf>, %41, %cst_32 [1] : vector<8x8xf32> to vector<8xf32>
    %43 = vector.shape_cast %42 : vector<8xf32> to vector<8x1xf32>
    %44 = vector.broadcast %43 : vector<8x1xf32> to vector<8x8xf32>
    %45 = arith.subf %41, %44 : vector<8x8xf32>
    %46 = math.exp %45 : vector<8x8xf32>
    %cst_33 = arith.constant dense<0.000000e+00> : vector<8xf32>
    %47 = vector.multi_reduction <add>, %46, %cst_33 [1] : vector<8x8xf32> to vector<8xf32>
    %48 = vector.shape_cast %47 : vector<8xf32> to vector<8x1xf32>
    %49 = tpu.reciprocal %48 {approx = true} : vector<8x1xf32> -> vector<8x1xf32>
    %50 = vector.broadcast %49 : vector<8x1xf32> to vector<8x8xf32>
    %51 = arith.mulf %46, %50 : vector<8x8xf32>
    %52 = arith.truncf %51 : vector<8x8xf32> to vector<8x8xbf16>
    %cst_34 = arith.constant dense<0.000000e+00> : vector<8x8xf32>
    %53 = tpu.matmul %52, %40, %cst_34 {dimension_numbers = #tpu.dot_dimension_numbers<[1], [0], [0], [1], [0, 0, 1, 1], [], []>} : vector<8x8xbf16>, vector<8x8xbf16>, vector<8x8xf32> -> vector<8x8xf32>
    %54 = arith.truncf %53 : vector<8x8xf32> to vector<8x8xbf16>
    %55 = vector.extract_strided_slice %9 {offsets = [0, 0], sizes = [8, 32], strides = [1, 1]} : vector<32x32xbf16> to vector<8x32xbf16>
    %cst_35 = arith.constant dense<0.000000e+00> : vector<8x32xf32>
    %56 = tpu.matmul %54, %55, %cst_35 {dimension_numbers = #tpu.dot_dimension_numbers<[1], [0], [0], [1], [0, 0, 1, 1], [], []>} : vector<8x8xbf16>, vector<8x32xbf16>, vector<8x32xf32> -> vector<8x32xf32>
    %57 = arith.addf %34, %56 : vector<8x32xf32>
    %58 = vector.extract_strided_slice %29 {offsets = [0, 8], sizes = [8, 8], strides = [1, 1]} : vector<8x32xf32> to vector<8x8xf32>
    %59 = arith.truncf %58 : vector<8x8xf32> to vector<8x8xbf16>
    %60 = vector.extract_strided_slice %32 {offsets = [0, 8], sizes = [8, 8], strides = [1, 1]} : vector<8x32xf32> to vector<8x8xf32>
    %61 = arith.truncf %60 : vector<8x8xf32> to vector<8x8xbf16>
    %62 = vector.extract_strided_slice %33 {offsets = [0, 8], sizes = [8, 8], strides = [1, 1]} : vector<8x32xf32> to vector<8x8xf32>
    %63 = arith.truncf %62 : vector<8x8xf32> to vector<8x8xbf16>
    %cst_36 = arith.constant dense<0.000000e+00> : vector<8x8xf32>
    %64 = tpu.matmul %59, %61, %cst_36 {dimension_numbers = #tpu.dot_dimension_numbers<[1], [1], [0], [0], [0, 0, 1, 0], [], []>} : vector<8x8xbf16>, vector<8x8xbf16>, vector<8x8xf32> -> vector<8x8xf32>
    %cst_37 = arith.constant dense<0xFF800000> : vector<8xf32>
    %65 = vector.multi_reduction <maximumf>, %64, %cst_37 [1] : vector<8x8xf32> to vector<8xf32>
    %66 = vector.shape_cast %65 : vector<8xf32> to vector<8x1xf32>
    %67 = vector.broadcast %66 : vector<8x1xf32> to vector<8x8xf32>
    %68 = arith.subf %64, %67 : vector<8x8xf32>
    %69 = math.exp %68 : vector<8x8xf32>
    %cst_38 = arith.constant dense<0.000000e+00> : vector<8xf32>
    %70 = vector.multi_reduction <add>, %69, %cst_38 [1] : vector<8x8xf32> to vector<8xf32>
    %71 = vector.shape_cast %70 : vector<8xf32> to vector<8x1xf32>
    %72 = tpu.reciprocal %71 {approx = true} : vector<8x1xf32> -> vector<8x1xf32>
    %73 = vector.broadcast %72 : vector<8x1xf32> to vector<8x8xf32>
    %74 = arith.mulf %69, %73 : vector<8x8xf32>
    %75 = arith.truncf %74 : vector<8x8xf32> to vector<8x8xbf16>
    %cst_39 = arith.constant dense<0.000000e+00> : vector<8x8xf32>
    %76 = tpu.matmul %75, %63, %cst_39 {dimension_numbers = #tpu.dot_dimension_numbers<[1], [0], [0], [1], [0, 0, 1, 1], [], []>} : vector<8x8xbf16>, vector<8x8xbf16>, vector<8x8xf32> -> vector<8x8xf32>
    %77 = arith.truncf %76 : vector<8x8xf32> to vector<8x8xbf16>
    %78 = vector.extract_strided_slice %9 {offsets = [8, 0], sizes = [8, 32], strides = [1, 1]} : vector<32x32xbf16> to vector<8x32xbf16>
    %cst_40 = arith.constant dense<0.000000e+00> : vector<8x32xf32>
    %79 = tpu.matmul %77, %78, %cst_40 {dimension_numbers = #tpu.dot_dimension_numbers<[1], [0], [0], [1], [0, 0, 1, 1], [], []>} : vector<8x8xbf16>, vector<8x32xbf16>, vector<8x32xf32> -> vector<8x32xf32>
    %80 = arith.addf %57, %79 : vector<8x32xf32>
    %81 = vector.extract_strided_slice %29 {offsets = [0, 16], sizes = [8, 8], strides = [1, 1]} : vector<8x32xf32> to vector<8x8xf32>
    %82 = arith.truncf %81 : vector<8x8xf32> to vector<8x8xbf16>
    %83 = vector.extract_strided_slice %32 {offsets = [0, 16], sizes = [8, 8], strides = [1, 1]} : vector<8x32xf32> to vector<8x8xf32>
    %84 = arith.truncf %83 : vector<8x8xf32> to vector<8x8xbf16>
    %85 = vector.extract_strided_slice %33 {offsets = [0, 16], sizes = [8, 8], strides = [1, 1]} : vector<8x32xf32> to vector<8x8xf32>
    %86 = arith.truncf %85 : vector<8x8xf32> to vector<8x8xbf16>
    %cst_41 = arith.constant dense<0.000000e+00> : vector<8x8xf32>
    %87 = tpu.matmul %82, %84, %cst_41 {dimension_numbers = #tpu.dot_dimension_numbers<[1], [1], [0], [0], [0, 0, 1, 0], [], []>} : vector<8x8xbf16>, vector<8x8xbf16>, vector<8x8xf32> -> vector<8x8xf32>
    %cst_42 = arith.constant dense<0xFF800000> : vector<8xf32>
    %88 = vector.multi_reduction <maximumf>, %87, %cst_42 [1] : vector<8x8xf32> to vector<8xf32>
    %89 = vector.shape_cast %88 : vector<8xf32> to vector<8x1xf32>
    %90 = vector.broadcast %89 : vector<8x1xf32> to vector<8x8xf32>
    %91 = arith.subf %87, %90 : vector<8x8xf32>
    %92 = math.exp %91 : vector<8x8xf32>
    %cst_43 = arith.constant dense<0.000000e+00> : vector<8xf32>
    %93 = vector.multi_reduction <add>, %92, %cst_43 [1] : vector<8x8xf32> to vector<8xf32>
    %94 = vector.shape_cast %93 : vector<8xf32> to vector<8x1xf32>
    %95 = tpu.reciprocal %94 {approx = true} : vector<8x1xf32> -> vector<8x1xf32>
    %96 = vector.broadcast %95 : vector<8x1xf32> to vector<8x8xf32>
    %97 = arith.mulf %92, %96 : vector<8x8xf32>
    %98 = arith.truncf %97 : vector<8x8xf32> to vector<8x8xbf16>
    %cst_44 = arith.constant dense<0.000000e+00> : vector<8x8xf32>
    %99 = tpu.matmul %98, %86, %cst_44 {dimension_numbers = #tpu.dot_dimension_numbers<[1], [0], [0], [1], [0, 0, 1, 1], [], []>} : vector<8x8xbf16>, vector<8x8xbf16>, vector<8x8xf32> -> vector<8x8xf32>
    %100 = arith.truncf %99 : vector<8x8xf32> to vector<8x8xbf16>
    %101 = vector.extract_strided_slice %9 {offsets = [16, 0], sizes = [8, 32], strides = [1, 1]} : vector<32x32xbf16> to vector<8x32xbf16>
    %cst_45 = arith.constant dense<0.000000e+00> : vector<8x32xf32>
    %102 = tpu.matmul %100, %101, %cst_45 {dimension_numbers = #tpu.dot_dimension_numbers<[1], [0], [0], [1], [0, 0, 1, 1], [], []>} : vector<8x8xbf16>, vector<8x32xbf16>, vector<8x32xf32> -> vector<8x32xf32>
    %103 = arith.addf %80, %102 : vector<8x32xf32>
    %104 = vector.extract_strided_slice %29 {offsets = [0, 24], sizes = [8, 8], strides = [1, 1]} : vector<8x32xf32> to vector<8x8xf32>
    %105 = arith.truncf %104 : vector<8x8xf32> to vector<8x8xbf16>
    %106 = vector.extract_strided_slice %32 {offsets = [0, 24], sizes = [8, 8], strides = [1, 1]} : vector<8x32xf32> to vector<8x8xf32>
    %107 = arith.truncf %106 : vector<8x8xf32> to vector<8x8xbf16>
    %108 = vector.extract_strided_slice %33 {offsets = [0, 24], sizes = [8, 8], strides = [1, 1]} : vector<8x32xf32> to vector<8x8xf32>
    %109 = arith.truncf %108 : vector<8x8xf32> to vector<8x8xbf16>
    %cst_46 = arith.constant dense<0.000000e+00> : vector<8x8xf32>
    %110 = tpu.matmul %105, %107, %cst_46 {dimension_numbers = #tpu.dot_dimension_numbers<[1], [1], [0], [0], [0, 0, 1, 0], [], []>} : vector<8x8xbf16>, vector<8x8xbf16>, vector<8x8xf32> -> vector<8x8xf32>
    %cst_47 = arith.constant dense<0xFF800000> : vector<8xf32>
    %111 = vector.multi_reduction <maximumf>, %110, %cst_47 [1] : vector<8x8xf32> to vector<8xf32>
    %112 = vector.shape_cast %111 : vector<8xf32> to vector<8x1xf32>
    %113 = vector.broadcast %112 : vector<8x1xf32> to vector<8x8xf32>
    %114 = arith.subf %110, %113 : vector<8x8xf32>
    %115 = math.exp %114 : vector<8x8xf32>
    %cst_48 = arith.constant dense<0.000000e+00> : vector<8xf32>
    %116 = vector.multi_reduction <add>, %115, %cst_48 [1] : vector<8x8xf32> to vector<8xf32>
    %117 = vector.shape_cast %116 : vector<8xf32> to vector<8x1xf32>
    %118 = tpu.reciprocal %117 {approx = true} : vector<8x1xf32> -> vector<8x1xf32>
    %119 = vector.broadcast %118 : vector<8x1xf32> to vector<8x8xf32>
    %120 = arith.mulf %115, %119 : vector<8x8xf32>
    %121 = arith.truncf %120 : vector<8x8xf32> to vector<8x8xbf16>
    %cst_49 = arith.constant dense<0.000000e+00> : vector<8x8xf32>
    %122 = tpu.matmul %121, %109, %cst_49 {dimension_numbers = #tpu.dot_dimension_numbers<[1], [0], [0], [1], [0, 0, 1, 1], [], []>} : vector<8x8xbf16>, vector<8x8xbf16>, vector<8x8xf32> -> vector<8x8xf32>
    %123 = arith.truncf %122 : vector<8x8xf32> to vector<8x8xbf16>
    %124 = vector.extract_strided_slice %9 {offsets = [24, 0], sizes = [8, 32], strides = [1, 1]} : vector<32x32xbf16> to vector<8x32xbf16>
    %cst_50 = arith.constant dense<0.000000e+00> : vector<8x32xf32>
    %125 = tpu.matmul %123, %124, %cst_50 {dimension_numbers = #tpu.dot_dimension_numbers<[1], [0], [0], [1], [0, 0, 1, 1], [], []>} : vector<8x8xbf16>, vector<8x32xbf16>, vector<8x32xf32> -> vector<8x32xf32>
    %126 = arith.addf %103, %125 : vector<8x32xf32>
    %127 = vector.broadcast %10 : vector<1x32xf32> to vector<8x32xf32>
    %128 = arith.addf %126, %127 : vector<8x32xf32>
    %129 = arith.addf %1, %128 : vector<8x32xf32>
    %cst_51 = arith.constant dense<0.000000e+00> : vector<8xf32>
    %130 = vector.multi_reduction <add>, %129, %cst_51 [1] : vector<8x32xf32> to vector<8xf32>
    %131 = vector.shape_cast %130 : vector<8xf32> to vector<8x1xf32>
    %cst_52 = arith.constant 3.200000e+01 : f32
    %132 = vector.broadcast %cst_52 : f32 to vector<8x1xf32>
    %133 = arith.divf %131, %132 : vector<8x1xf32>
    %134 = vector.broadcast %133 : vector<8x1xf32> to vector<8x32xf32>
    %135 = arith.subf %129, %134 : vector<8x32xf32>
    %136 = arith.mulf %135, %135 : vector<8x32xf32>
    %cst_53 = arith.constant dense<0.000000e+00> : vector<8xf32>
    %137 = vector.multi_reduction <add>, %136, %cst_53 [1] : vector<8x32xf32> to vector<8xf32>
    %138 = vector.shape_cast %137 : vector<8xf32> to vector<8x1xf32>
    %cst_54 = arith.constant 3.200000e+01 : f32
    %139 = vector.broadcast %cst_54 : f32 to vector<8x1xf32>
    %140 = arith.divf %138, %139 : vector<8x1xf32>
    %cst_55 = arith.constant 9.99999974E-6 : f32
    %141 = vector.broadcast %cst_55 : f32 to vector<8x1xf32>
    %142 = arith.addf %140, %141 : vector<8x1xf32>
    %143 = math.rsqrt %142 : vector<8x1xf32>
    %144 = vector.broadcast %143 : vector<8x1xf32> to vector<8x32xf32>
    %145 = arith.mulf %135, %144 : vector<8x32xf32>
    %146 = vector.broadcast %17 : vector<1x32xf32> to vector<8x32xf32>
    %147 = arith.mulf %145, %146 : vector<8x32xf32>
    %148 = vector.broadcast %18 : vector<1x32xf32> to vector<8x32xf32>
    %149 = arith.addf %147, %148 : vector<8x32xf32>
    %150 = arith.truncf %149 : vector<8x32xf32> to vector<8x32xbf16>
    %cst_56 = arith.constant dense<0.000000e+00> : vector<8x64xf32>
    %151 = tpu.matmul %150, %12, %cst_56 {dimension_numbers = #tpu.dot_dimension_numbers<[1], [0], [0], [1], [0, 0, 1, 1], [], []>} : vector<8x32xbf16>, vector<32x64xbf16>, vector<8x64xf32> -> vector<8x64xf32>
    %152 = vector.broadcast %13 : vector<1x64xf32> to vector<8x64xf32>
    %153 = arith.addf %151, %152 : vector<8x64xf32>
    %cst_57 = arith.constant 0.000000e+00 : f32
    %154 = vector.broadcast %cst_57 : f32 to vector<8x64xf32>
    %155 = arith.maximumf %153, %154 : vector<8x64xf32>
    %156 = arith.truncf %155 : vector<8x64xf32> to vector<8x64xbf16>
    %cst_58 = arith.constant dense<0.000000e+00> : vector<8x32xf32>
    %157 = tpu.matmul %156, %15, %cst_58 {dimension_numbers = #tpu.dot_dimension_numbers<[1], [0], [0], [1], [0, 0, 1, 1], [], []>} : vector<8x64xbf16>, vector<64x32xbf16>, vector<8x32xf32> -> vector<8x32xf32>
    %158 = vector.broadcast %16 : vector<1x32xf32> to vector<8x32xf32>
    %159 = arith.addf %157, %158 : vector<8x32xf32>
    %160 = arith.addf %149, %159 : vector<8x32xf32>
    %cst_59 = arith.constant dense<0.000000e+00> : vector<8xf32>
    %161 = vector.multi_reduction <add>, %160, %cst_59 [1] : vector<8x32xf32> to vector<8xf32>
    %162 = vector.shape_cast %161 : vector<8xf32> to vector<8x1xf32>
    %cst_60 = arith.constant 3.200000e+01 : f32
    %163 = vector.broadcast %cst_60 : f32 to vector<8x1xf32>
    %164 = arith.divf %162, %163 : vector<8x1xf32>
    %165 = vector.broadcast %164 : vector<8x1xf32> to vector<8x32xf32>
    %166 = arith.subf %160, %165 : vector<8x32xf32>
    %167 = arith.mulf %166, %166 : vector<8x32xf32>
    %cst_61 = arith.constant dense<0.000000e+00> : vector<8xf32>
    %168 = vector.multi_reduction <add>, %167, %cst_61 [1] : vector<8x32xf32> to vector<8xf32>
    %169 = vector.shape_cast %168 : vector<8xf32> to vector<8x1xf32>
    %cst_62 = arith.constant 3.200000e+01 : f32
    %170 = vector.broadcast %cst_62 : f32 to vector<8x1xf32>
    %171 = arith.divf %169, %170 : vector<8x1xf32>
    %cst_63 = arith.constant 9.99999974E-6 : f32
    %172 = vector.broadcast %cst_63 : f32 to vector<8x1xf32>
    %173 = arith.addf %171, %172 : vector<8x1xf32>
    %174 = math.rsqrt %173 : vector<8x1xf32>
    %175 = vector.broadcast %174 : vector<8x1xf32> to vector<8x32xf32>
    %176 = arith.mulf %166, %175 : vector<8x32xf32>
    %177 = vector.broadcast %19 : vector<1x32xf32> to vector<8x32xf32>
    %178 = arith.mulf %176, %177 : vector<8x32xf32>
    %179 = vector.broadcast %20 : vector<1x32xf32> to vector<8x32xf32>
    %180 = arith.addf %178, %179 : vector<8x32xf32>
    %c1_i32 = arith.constant 1 : i32
    %181 = arith.truncf %180 : vector<8x32xf32> to vector<8x32xbf16>
    %cst_64 = arith.constant dense<0.000000e+00> : vector<8x96xf32>
    %182 = tpu.matmul %181, %6, %cst_64 {dimension_numbers = #tpu.dot_dimension_numbers<[1], [0], [0], [1], [0, 0, 1, 1], [], []>} : vector<8x32xbf16>, vector<32x96xbf16>, vector<8x96xf32> -> vector<8x96xf32>
    %183 = vector.broadcast %7 : vector<1x96xf32> to vector<8x96xf32>
    %184 = arith.addf %182, %183 : vector<8x96xf32>
    %185 = vector.extract_strided_slice %184 {offsets = [0, 0], sizes = [8, 32], strides = [1, 1]} : vector<8x96xf32> to vector<8x32xf32>
    %186 = vector.extract_strided_slice %22 {offsets = [0, 0], sizes = [8, 32], strides = [1, 1]} : vector<8x64xf32> to vector<8x32xf32>
    %187 = arith.addf %185, %186 : vector<8x32xf32>
    %188 = vector.extract_strided_slice %184 {offsets = [0, 32], sizes = [8, 32], strides = [1, 1]} : vector<8x96xf32> to vector<8x32xf32>
    %189 = vector.extract_strided_slice %22 {offsets = [0, 32], sizes = [8, 32], strides = [1, 1]} : vector<8x64xf32> to vector<8x32xf32>
    %190 = arith.addf %188, %189 : vector<8x32xf32>
    %191 = vector.extract_strided_slice %184 {offsets = [0, 64], sizes = [8, 32], strides = [1, 1]} : vector<8x96xf32> to vector<8x32xf32>
    %cst_65 = arith.constant 0.000000e+00 : f32
    %192 = vector.broadcast %cst_65 : f32 to vector<8x32xf32>
    %193 = vector.extract_strided_slice %187 {offsets = [0, 0], sizes = [8, 8], strides = [1, 1]} : vector<8x32xf32> to vector<8x8xf32>
    %194 = arith.truncf %193 : vector<8x8xf32> to vector<8x8xbf16>
    %195 = vector.extract_strided_slice %190 {offsets = [0, 0], sizes = [8, 8], strides = [1, 1]} : vector<8x32xf32> to vector<8x8xf32>
    %196 = arith.truncf %195 : vector<8x8xf32> to vector<8x8xbf16>
    %197 = vector.extract_strided_slice %191 {offsets = [0, 0], sizes = [8, 8], strides = [1, 1]} : vector<8x32xf32> to vector<8x8xf32>
    %198 = arith.truncf %197 : vector<8x8xf32> to vector<8x8xbf16>
    %cst_66 = arith.constant dense<0.000000e+00> : vector<8x8xf32>
    %199 = tpu.matmul %194, %196, %cst_66 {dimension_numbers = #tpu.dot_dimension_numbers<[1], [1], [0], [0], [0, 0, 1, 0], [], []>} : vector<8x8xbf16>, vector<8x8xbf16>, vector<8x8xf32> -> vector<8x8xf32>
    %cst_67 = arith.constant dense<0xFF800000> : vector<8xf32>
    %200 = vector.multi_reduction <maximumf>, %199, %cst_67 [1] : vector<8x8xf32> to vector<8xf32>
    %201 = vector.shape_cast %200 : vector<8xf32> to vector<8x1xf32>
    %202 = vector.broadcast %201 : vector<8x1xf32> to vector<8x8xf32>
    %203 = arith.subf %199, %202 : vector<8x8xf32>
    %204 = math.exp %203 : vector<8x8xf32>
    %cst_68 = arith.constant dense<0.000000e+00> : vector<8xf32>
    %205 = vector.multi_reduction <add>, %204, %cst_68 [1] : vector<8x8xf32> to vector<8xf32>
    %206 = vector.shape_cast %205 : vector<8xf32> to vector<8x1xf32>
    %207 = tpu.reciprocal %206 {approx = true} : vector<8x1xf32> -> vector<8x1xf32>
    %208 = vector.broadcast %207 : vector<8x1xf32> to vector<8x8xf32>
    %209 = arith.mulf %204, %208 : vector<8x8xf32>
    %210 = arith.truncf %209 : vector<8x8xf32> to vector<8x8xbf16>
    %cst_69 = arith.constant dense<0.000000e+00> : vector<8x8xf32>
    %211 = tpu.matmul %210, %198, %cst_69 {dimension_numbers = #tpu.dot_dimension_numbers<[1], [0], [0], [1], [0, 0, 1, 1], [], []>} : vector<8x8xbf16>, vector<8x8xbf16>, vector<8x8xf32> -> vector<8x8xf32>
    %212 = arith.truncf %211 : vector<8x8xf32> to vector<8x8xbf16>
    %213 = vector.extract_strided_slice %9 {offsets = [0, 0], sizes = [8, 32], strides = [1, 1]} : vector<32x32xbf16> to vector<8x32xbf16>
    %cst_70 = arith.constant dense<0.000000e+00> : vector<8x32xf32>
    %214 = tpu.matmul %212, %213, %cst_70 {dimension_numbers = #tpu.dot_dimension_numbers<[1], [0], [0], [1], [0, 0, 1, 1], [], []>} : vector<8x8xbf16>, vector<8x32xbf16>, vector<8x32xf32> -> vector<8x32xf32>
    %215 = arith.addf %192, %214 : vector<8x32xf32>
    %216 = vector.extract_strided_slice %187 {offsets = [0, 8], sizes = [8, 8], strides = [1, 1]} : vector<8x32xf32> to vector<8x8xf32>
    %217 = arith.truncf %216 : vector<8x8xf32> to vector<8x8xbf16>
    %218 = vector.extract_strided_slice %190 {offsets = [0, 8], sizes = [8, 8], strides = [1, 1]} : vector<8x32xf32> to vector<8x8xf32>
    %219 = arith.truncf %218 : vector<8x8xf32> to vector<8x8xbf16>
    %220 = vector.extract_strided_slice %191 {offsets = [0, 8], sizes = [8, 8], strides = [1, 1]} : vector<8x32xf32> to vector<8x8xf32>
    %221 = arith.truncf %220 : vector<8x8xf32> to vector<8x8xbf16>
    %cst_71 = arith.constant dense<0.000000e+00> : vector<8x8xf32>
    %222 = tpu.matmul %217, %219, %cst_71 {dimension_numbers = #tpu.dot_dimension_numbers<[1], [1], [0], [0], [0, 0, 1, 0], [], []>} : vector<8x8xbf16>, vector<8x8xbf16>, vector<8x8xf32> -> vector<8x8xf32>
    %cst_72 = arith.constant dense<0xFF800000> : vector<8xf32>
    %223 = vector.multi_reduction <maximumf>, %222, %cst_72 [1] : vector<8x8xf32> to vector<8xf32>
    %224 = vector.shape_cast %223 : vector<8xf32> to vector<8x1xf32>
    %225 = vector.broadcast %224 : vector<8x1xf32> to vector<8x8xf32>
    %226 = arith.subf %222, %225 : vector<8x8xf32>
    %227 = math.exp %226 : vector<8x8xf32>
    %cst_73 = arith.constant dense<0.000000e+00> : vector<8xf32>
    %228 = vector.multi_reduction <add>, %227, %cst_73 [1] : vector<8x8xf32> to vector<8xf32>
    %229 = vector.shape_cast %228 : vector<8xf32> to vector<8x1xf32>
    %230 = tpu.reciprocal %229 {approx = true} : vector<8x1xf32> -> vector<8x1xf32>
    %231 = vector.broadcast %230 : vector<8x1xf32> to vector<8x8xf32>
    %232 = arith.mulf %227, %231 : vector<8x8xf32>
    %233 = arith.truncf %232 : vector<8x8xf32> to vector<8x8xbf16>
    %cst_74 = arith.constant dense<0.000000e+00> : vector<8x8xf32>
    %234 = tpu.matmul %233, %221, %cst_74 {dimension_numbers = #tpu.dot_dimension_numbers<[1], [0], [0], [1], [0, 0, 1, 1], [], []>} : vector<8x8xbf16>, vector<8x8xbf16>, vector<8x8xf32> -> vector<8x8xf32>
    %235 = arith.truncf %234 : vector<8x8xf32> to vector<8x8xbf16>
    %236 = vector.extract_strided_slice %9 {offsets = [8, 0], sizes = [8, 32], strides = [1, 1]} : vector<32x32xbf16> to vector<8x32xbf16>
    %cst_75 = arith.constant dense<0.000000e+00> : vector<8x32xf32>
    %237 = tpu.matmul %235, %236, %cst_75 {dimension_numbers = #tpu.dot_dimension_numbers<[1], [0], [0], [1], [0, 0, 1, 1], [], []>} : vector<8x8xbf16>, vector<8x32xbf16>, vector<8x32xf32> -> vector<8x32xf32>
    %238 = arith.addf %215, %237 : vector<8x32xf32>
    %239 = vector.extract_strided_slice %187 {offsets = [0, 16], sizes = [8, 8], strides = [1, 1]} : vector<8x32xf32> to vector<8x8xf32>
    %240 = arith.truncf %239 : vector<8x8xf32> to vector<8x8xbf16>
    %241 = vector.extract_strided_slice %190 {offsets = [0, 16], sizes = [8, 8], strides = [1, 1]} : vector<8x32xf32> to vector<8x8xf32>
    %242 = arith.truncf %241 : vector<8x8xf32> to vector<8x8xbf16>
    %243 = vector.extract_strided_slice %191 {offsets = [0, 16], sizes = [8, 8], strides = [1, 1]} : vector<8x32xf32> to vector<8x8xf32>
    %244 = arith.truncf %243 : vector<8x8xf32> to vector<8x8xbf16>
    %cst_76 = arith.constant dense<0.000000e+00> : vector<8x8xf32>
    %245 = tpu.matmul %240, %242, %cst_76 {dimension_numbers = #tpu.dot_dimension_numbers<[1], [1], [0], [0], [0, 0, 1, 0], [], []>} : vector<8x8xbf16>, vector<8x8xbf16>, vector<8x8xf32> -> vector<8x8xf32>
    %cst_77 = arith.constant dense<0xFF800000> : vector<8xf32>
    %246 = vector.multi_reduction <maximumf>, %245, %cst_77 [1] : vector<8x8xf32> to vector<8xf32>
    %247 = vector.shape_cast %246 : vector<8xf32> to vector<8x1xf32>
    %248 = vector.broadcast %247 : vector<8x1xf32> to vector<8x8xf32>
    %249 = arith.subf %245, %248 : vector<8x8xf32>
    %250 = math.exp %249 : vector<8x8xf32>
    %cst_78 = arith.constant dense<0.000000e+00> : vector<8xf32>
    %251 = vector.multi_reduction <add>, %250, %cst_78 [1] : vector<8x8xf32> to vector<8xf32>
    %252 = vector.shape_cast %251 : vector<8xf32> to vector<8x1xf32>
    %253 = tpu.reciprocal %252 {approx = true} : vector<8x1xf32> -> vector<8x1xf32>
    %254 = vector.broadcast %253 : vector<8x1xf32> to vector<8x8xf32>
    %255 = arith.mulf %250, %254 : vector<8x8xf32>
    %256 = arith.truncf %255 : vector<8x8xf32> to vector<8x8xbf16>
    %cst_79 = arith.constant dense<0.000000e+00> : vector<8x8xf32>
    %257 = tpu.matmul %256, %244, %cst_79 {dimension_numbers = #tpu.dot_dimension_numbers<[1], [0], [0], [1], [0, 0, 1, 1], [], []>} : vector<8x8xbf16>, vector<8x8xbf16>, vector<8x8xf32> -> vector<8x8xf32>
    %258 = arith.truncf %257 : vector<8x8xf32> to vector<8x8xbf16>
    %259 = vector.extract_strided_slice %9 {offsets = [16, 0], sizes = [8, 32], strides = [1, 1]} : vector<32x32xbf16> to vector<8x32xbf16>
    %cst_80 = arith.constant dense<0.000000e+00> : vector<8x32xf32>
    %260 = tpu.matmul %258, %259, %cst_80 {dimension_numbers = #tpu.dot_dimension_numbers<[1], [0], [0], [1], [0, 0, 1, 1], [], []>} : vector<8x8xbf16>, vector<8x32xbf16>, vector<8x32xf32> -> vector<8x32xf32>
    %261 = arith.addf %238, %260 : vector<8x32xf32>
    %262 = vector.extract_strided_slice %187 {offsets = [0, 24], sizes = [8, 8], strides = [1, 1]} : vector<8x32xf32> to vector<8x8xf32>
    %263 = arith.truncf %262 : vector<8x8xf32> to vector<8x8xbf16>
    %264 = vector.extract_strided_slice %190 {offsets = [0, 24], sizes = [8, 8], strides = [1, 1]} : vector<8x32xf32> to vector<8x8xf32>
    %265 = arith.truncf %264 : vector<8x8xf32> to vector<8x8xbf16>
    %266 = vector.extract_strided_slice %191 {offsets = [0, 24], sizes = [8, 8], strides = [1, 1]} : vector<8x32xf32> to vector<8x8xf32>
    %267 = arith.truncf %266 : vector<8x8xf32> to vector<8x8xbf16>
    %cst_81 = arith.constant dense<0.000000e+00> : vector<8x8xf32>
    %268 = tpu.matmul %263, %265, %cst_81 {dimension_numbers = #tpu.dot_dimension_numbers<[1], [1], [0], [0], [0, 0, 1, 0], [], []>} : vector<8x8xbf16>, vector<8x8xbf16>, vector<8x8xf32> -> vector<8x8xf32>
    %cst_82 = arith.constant dense<0xFF800000> : vector<8xf32>
    %269 = vector.multi_reduction <maximumf>, %268, %cst_82 [1] : vector<8x8xf32> to vector<8xf32>
    %270 = vector.shape_cast %269 : vector<8xf32> to vector<8x1xf32>
    %271 = vector.broadcast %270 : vector<8x1xf32> to vector<8x8xf32>
    %272 = arith.subf %268, %271 : vector<8x8xf32>
    %273 = math.exp %272 : vector<8x8xf32>
    %cst_83 = arith.constant dense<0.000000e+00> : vector<8xf32>
    %274 = vector.multi_reduction <add>, %273, %cst_83 [1] : vector<8x8xf32> to vector<8xf32>
    %275 = vector.shape_cast %274 : vector<8xf32> to vector<8x1xf32>
    %276 = tpu.reciprocal %275 {approx = true} : vector<8x1xf32> -> vector<8x1xf32>
    %277 = vector.broadcast %276 : vector<8x1xf32> to vector<8x8xf32>
    %278 = arith.mulf %273, %277 : vector<8x8xf32>
    %279 = arith.truncf %278 : vector<8x8xf32> to vector<8x8xbf16>
    %cst_84 = arith.constant dense<0.000000e+00> : vector<8x8xf32>
    %280 = tpu.matmul %279, %267, %cst_84 {dimension_numbers = #tpu.dot_dimension_numbers<[1], [0], [0], [1], [0, 0, 1, 1], [], []>} : vector<8x8xbf16>, vector<8x8xbf16>, vector<8x8xf32> -> vector<8x8xf32>
    %281 = arith.truncf %280 : vector<8x8xf32> to vector<8x8xbf16>
    %282 = vector.extract_strided_slice %9 {offsets = [24, 0], sizes = [8, 32], strides = [1, 1]} : vector<32x32xbf16> to vector<8x32xbf16>
    %cst_85 = arith.constant dense<0.000000e+00> : vector<8x32xf32>
    %283 = tpu.matmul %281, %282, %cst_85 {dimension_numbers = #tpu.dot_dimension_numbers<[1], [0], [0], [1], [0, 0, 1, 1], [], []>} : vector<8x8xbf16>, vector<8x32xbf16>, vector<8x32xf32> -> vector<8x32xf32>
    %284 = arith.addf %261, %283 : vector<8x32xf32>
    %285 = vector.broadcast %10 : vector<1x32xf32> to vector<8x32xf32>
    %286 = arith.addf %284, %285 : vector<8x32xf32>
    %287 = arith.addf %180, %286 : vector<8x32xf32>
    %cst_86 = arith.constant dense<0.000000e+00> : vector<8xf32>
    %288 = vector.multi_reduction <add>, %287, %cst_86 [1] : vector<8x32xf32> to vector<8xf32>
    %289 = vector.shape_cast %288 : vector<8xf32> to vector<8x1xf32>
    %cst_87 = arith.constant 3.200000e+01 : f32
    %290 = vector.broadcast %cst_87 : f32 to vector<8x1xf32>
    %291 = arith.divf %289, %290 : vector<8x1xf32>
    %292 = vector.broadcast %291 : vector<8x1xf32> to vector<8x32xf32>
    %293 = arith.subf %287, %292 : vector<8x32xf32>
    %294 = arith.mulf %293, %293 : vector<8x32xf32>
    %cst_88 = arith.constant dense<0.000000e+00> : vector<8xf32>
    %295 = vector.multi_reduction <add>, %294, %cst_88 [1] : vector<8x32xf32> to vector<8xf32>
    %296 = vector.shape_cast %295 : vector<8xf32> to vector<8x1xf32>
    %cst_89 = arith.constant 3.200000e+01 : f32
    %297 = vector.broadcast %cst_89 : f32 to vector<8x1xf32>
    %298 = arith.divf %296, %297 : vector<8x1xf32>
    %cst_90 = arith.constant 9.99999974E-6 : f32
    %299 = vector.broadcast %cst_90 : f32 to vector<8x1xf32>
    %300 = arith.addf %298, %299 : vector<8x1xf32>
    %301 = math.rsqrt %300 : vector<8x1xf32>
    %302 = vector.broadcast %301 : vector<8x1xf32> to vector<8x32xf32>
    %303 = arith.mulf %293, %302 : vector<8x32xf32>
    %304 = vector.broadcast %17 : vector<1x32xf32> to vector<8x32xf32>
    %305 = arith.mulf %303, %304 : vector<8x32xf32>
    %306 = vector.broadcast %18 : vector<1x32xf32> to vector<8x32xf32>
    %307 = arith.addf %305, %306 : vector<8x32xf32>
    %308 = arith.truncf %307 : vector<8x32xf32> to vector<8x32xbf16>
    %cst_91 = arith.constant dense<0.000000e+00> : vector<8x64xf32>
    %309 = tpu.matmul %308, %12, %cst_91 {dimension_numbers = #tpu.dot_dimension_numbers<[1], [0], [0], [1], [0, 0, 1, 1], [], []>} : vector<8x32xbf16>, vector<32x64xbf16>, vector<8x64xf32> -> vector<8x64xf32>
    %310 = vector.broadcast %13 : vector<1x64xf32> to vector<8x64xf32>
    %311 = arith.addf %309, %310 : vector<8x64xf32>
    %cst_92 = arith.constant 0.000000e+00 : f32
    %312 = vector.broadcast %cst_92 : f32 to vector<8x64xf32>
    %313 = arith.maximumf %311, %312 : vector<8x64xf32>
    %314 = arith.truncf %313 : vector<8x64xf32> to vector<8x64xbf16>
    %cst_93 = arith.constant dense<0.000000e+00> : vector<8x32xf32>
    %315 = tpu.matmul %314, %15, %cst_93 {dimension_numbers = #tpu.dot_dimension_numbers<[1], [0], [0], [1], [0, 0, 1, 1], [], []>} : vector<8x64xbf16>, vector<64x32xbf16>, vector<8x32xf32> -> vector<8x32xf32>
    %316 = vector.broadcast %16 : vector<1x32xf32> to vector<8x32xf32>
    %317 = arith.addf %315, %316 : vector<8x32xf32>
    %318 = arith.addf %307, %317 : vector<8x32xf32>
    %cst_94 = arith.constant dense<0.000000e+00> : vector<8xf32>
    %319 = vector.multi_reduction <add>, %318, %cst_94 [1] : vector<8x32xf32> to vector<8xf32>
    %320 = vector.shape_cast %319 : vector<8xf32> to vector<8x1xf32>
    %cst_95 = arith.constant 3.200000e+01 : f32
    %321 = vector.broadcast %cst_95 : f32 to vector<8x1xf32>
    %322 = arith.divf %320, %321 : vector<8x1xf32>
    %323 = vector.broadcast %322 : vector<8x1xf32> to vector<8x32xf32>
    %324 = arith.subf %318, %323 : vector<8x32xf32>
    %325 = arith.mulf %324, %324 : vector<8x32xf32>
    %cst_96 = arith.constant dense<0.000000e+00> : vector<8xf32>
    %326 = vector.multi_reduction <add>, %325, %cst_96 [1] : vector<8x32xf32> to vector<8xf32>
    %327 = vector.shape_cast %326 : vector<8xf32> to vector<8x1xf32>
    %cst_97 = arith.constant 3.200000e+01 : f32
    %328 = vector.broadcast %cst_97 : f32 to vector<8x1xf32>
    %329 = arith.divf %327, %328 : vector<8x1xf32>
    %cst_98 = arith.constant 9.99999974E-6 : f32
    %330 = vector.broadcast %cst_98 : f32 to vector<8x1xf32>
    %331 = arith.addf %329, %330 : vector<8x1xf32>
    %332 = math.rsqrt %331 : vector<8x1xf32>
    %333 = vector.broadcast %332 : vector<8x1xf32> to vector<8x32xf32>
    %334 = arith.mulf %324, %333 : vector<8x32xf32>
    %335 = vector.broadcast %19 : vector<1x32xf32> to vector<8x32xf32>
    %336 = arith.mulf %334, %335 : vector<8x32xf32>
    %337 = vector.broadcast %20 : vector<1x32xf32> to vector<8x32xf32>
    %338 = arith.addf %336, %337 : vector<8x32xf32>
    %c0_99 = arith.constant 0 : index
    %c0_100 = arith.constant 0 : index
    %c0_101 = arith.constant 0 : index
    %339 = vector.load %arg15[%c0_99, %c0_100, %c0_101] : memref<1x8x32xf32, #tpu.memory_space<vmem>>, vector<1x8x32xf32>
    %340 = vector.shape_cast %339 : vector<1x8x32xf32> to vector<8x32xf32>
    %341 = vector.shape_cast %338 : vector<8x32xf32> to vector<1x8x32xf32>
    tpu.vector_store %arg15[%c0_99, %c0_100, %c0_101], %341 {strides = array<i32>} : memref<1x8x32xf32, #tpu.memory_space<vmem>>, vector<1x8x32xf32>,
    return
  }
  func.func @transform_0(%arg0: i32) -> (i32, i32, i32) {
    %c0_i32 = arith.constant 0 : i32
    %c0_i32_0 = arith.constant 0 : i32
    %c0_i32_1 = arith.constant 0 : i32
    return %arg0, %c0_i32, %c0_i32_0 : i32, i32, i32
  }
  func.func @transform_1(%arg0: i32) -> (i32, i32, i32) {
    %c0_i32 = arith.constant 0 : i32
    %c0_i32_0 = arith.constant 0 : i32
    %c0_i32_1 = arith.constant 0 : i32
    return %arg0, %c0_i32, %c0_i32_0 : i32, i32, i32
  }
  func.func @transform_2(%arg0: i32) -> (i32, i32) {
    %c0_i32 = arith.constant 0 : i32
    %c0_i32_0 = arith.constant 0 : i32
    %c0_i32_1 = arith.constant 0 : i32
    return %c0_i32, %c0_i32_0 : i32, i32
  }
  func.func @transform_3(%arg0: i32) -> (i32, i32) {
    %c0_i32 = arith.constant 0 : i32
    %c0_i32_0 = arith.constant 0 : i32
    %c0_i32_1 = arith.constant 0 : i32
    return %c0_i32, %c0_i32_0 : i32, i32
  }
  func.func @transform_4(%arg0: i32) -> (i32, i32) {
    %c0_i32 = arith.constant 0 : i32
    %c0_i32_0 = arith.constant 0 : i32
    %c0_i32_1 = arith.constant 0 : i32
    return %c0_i32, %c0_i32_0 : i32, i32
  }
  func.func @transform_5(%arg0: i32) -> (i32, i32) {
    %c0_i32 = arith.constant 0 : i32
    %c0_i32_0 = arith.constant 0 : i32
    %c0_i32_1 = arith.constant 0 : i32
    return %c0_i32, %c0_i32_0 : i32, i32
  }
  func.func @transform_6(%arg0: i32) -> (i32, i32) {
    %c0_i32 = arith.constant 0 : i32
    %c0_i32_0 = arith.constant 0 : i32
    %c0_i32_1 = arith.constant 0 : i32
    return %c0_i32, %c0_i32_0 : i32, i32
  }
  func.func @transform_7(%arg0: i32) -> (i32, i32) {
    %c0_i32 = arith.constant 0 : i32
    %c0_i32_0 = arith.constant 0 : i32
    %c0_i32_1 = arith.constant 0 : i32
    return %c0_i32, %c0_i32_0 : i32, i32
  }
  func.func @transform_8(%arg0: i32) -> (i32, i32) {
    %c0_i32 = arith.constant 0 : i32
    %c0_i32_0 = arith.constant 0 : i32
    %c0_i32_1 = arith.constant 0 : i32
    return %c0_i32, %c0_i32_0 : i32, i32
  }
  func.func @transform_9(%arg0: i32) -> (i32, i32) {
    %c0_i32 = arith.constant 0 : i32
    %c0_i32_0 = arith.constant 0 : i32
    %c0_i32_1 = arith.constant 0 : i32
    return %c0_i32, %c0_i32_0 : i32, i32
  }
  func.func @transform_10(%arg0: i32) -> (i32, i32) {
    %c0_i32 = arith.constant 0 : i32
    %c0_i32_0 = arith.constant 0 : i32
    %c0_i32_1 = arith.constant 0 : i32
    return %c0_i32, %c0_i32_0 : i32, i32
  }
  func.func @transform_11(%arg0: i32) -> (i32, i32) {
    %c0_i32 = arith.constant 0 : i32
    %c0_i32_0 = arith.constant 0 : i32
    %c0_i32_1 = arith.constant 0 : i32
    return %c0_i32, %c0_i32_0 : i32, i32
  }
  func.func @transform_12(%arg0: i32) -> (i32, i32) {
    %c0_i32 = arith.constant 0 : i32
    %c0_i32_0 = arith.constant 0 : i32
    %c0_i32_1 = arith.constant 0 : i32
    return %c0_i32, %c0_i32_0 : i32, i32
  }
  func.func @transform_13(%arg0: i32) -> (i32, i32) {
    %c0_i32 = arith.constant 0 : i32
    %c0_i32_0 = arith.constant 0 : i32
    %c0_i32_1 = arith.constant 0 : i32
    return %c0_i32, %c0_i32_0 : i32, i32
  }
  func.func @transform_14(%arg0: i32) -> (i32, i32, i32) {
    %c0_i32 = arith.constant 0 : i32
    %c0_i32_0 = arith.constant 0 : i32
    %c0_i32_1 = arith.constant 0 : i32
    return %arg0, %c0_i32, %c0_i32_0 : i32, i32, i32
  }
}

</mosaic_0001>

<bundles_post_ra>
// kernel: tpu_custom_call.1
= control target key start
LH: loop header
LB: loop body
LE: loop exit
PB: predicated region body
PF: predicated region fallthrough
CT: control target
= control target key end

     0   :  { %s3628_s0 = inlined_call_operand.hbm [shape: f32[2,8,32], index: 0, kind: input, shape index: {}]   ;;  %s3629_s1 = inlined_call_operand.hbm [shape: f32[2,8,32], index: 1, kind: input, shape index: {}]   ;;  %s3630_s2 = inlined_call_operand.vmem [shape: f32[32,96], index: 2, kind: input, shape index: {}]   ;;  %s3631_s3 = inlined_call_operand.vmem [shape: f32[1,96], index: 3, kind: input, shape index: {}]   ;;  %s3632_s4 = inlined_call_operand.vmem [shape: f32[32,32], index: 4, kind: input, shape index: {}]   ;;  %s3633_s5 = inlined_call_operand.vmem [shape: f32[1,32], index: 5, kind: input, shape index: {}]   ;;  %s3634_s6 = inlined_call_operand.vmem [shape: f32[1,32], index: 6, kind: input, shape index: {}]   ;;  %s3635_s7 = inlined_call_operand.vmem [shape: f32[1,32], index: 7, kind: input, shape index: {}]   ;;  %s3636_s8 = inlined_call_operand.vmem [shape: f32[32,64], index: 8, kind: input, shape index: {}]   ;;  %s3637_s9 = inlined_call_operand.vmem [shape: f32[1,64], index: 9, kind: input, shape index: {}]   ;;  %s3638_s10 = inlined_call_operand.vmem [shape: f32[64,32], index: 10, kind: input, shape index: {}]   ;;  %s3639_s11 = inlined_call_operand.vmem [shape: f32[1,32], index: 11, kind: input, shape index: {}]   ;;  %s3640_s12 = inlined_call_operand.vmem [shape: f32[1,32], index: 12, kind: input, shape index: {}]   ;;  %s3641_s13 = inlined_call_operand.vmem [shape: f32[1,32], index: 13, kind: input, shape index: {}]   ;;  %s3642_s14 = inlined_call_operand.hbm [shape: f32[2,8,32], index: 14, kind: output, shape index: {}]  }
   0x1   :  { %3661 = sst [smem:[#allocation17_spill]] %s3628_s0 }
   0x2   :  { %3662 = sst [smem:[#allocation18_spill]] %s3642_s14 }
   0x3   :  { %19 = vsyncpa [#allocation3], 0 }
   0x4   :  { %21 = vsyncpa [#allocation3 + $0x1], 0 }
   0x5   :  { %22 = vsyncpa [#allocation6], 0 }
   0x6   :  { %24 = vsyncpa [#allocation6 + $0x1], 0 }
   0x7   :  { %25 = vsyncpa [#allocation4], 0 }
   0x8   :  { %27 = vsyncpa [#allocation4 + $0x1], 0  ;;  %s3012_s29 = smov 0   ;;  %s3014_s30 = smov 0  }
   0x9   :  { %s3016_s15 = smov 0   ;;  %s3018_s16 = smov 0  }
   0xa LB: > { %3663 = sst [smem:[#allocation11_spill]] %s2907_s29  ;;  %s3033_s17 = sadd.s32 4294967295, %s2919_s16   ;;  %s2919_s16 = sphi %s3018_s16, %s3695_s16   ;;  %s2915_s15 = sphi %s3016_s15, %s3697_s15   ;;  %s2911_s30 = sphi %s3014_s30, %s3699_s30   ;;  %s2907_s29 = sphi %s3012_s29, %s3698_s29  }
   0xb   : > { %3664 = sst [smem:[#allocation12_spill]] %s2915_s15  ;;  %s2356_s18 = sadd.s32 4294967294, %s2919_s16  }
   0xc   : > { %s3037_s19 = sadd.s32 1, %s2919_s16   ;;  %s40_s20 = sadd.s32 1, %s2915_s15 }
   0xd   : > { %3665 = sst [smem:[#allocation13_spill]] %s3037_s19  ;;  %s37_s21 = ssub.s32 %s2919_s16, %s3037_s19 }
   0xe   : > { %p47_p0 = scmp.ne.s32.totalorder %s2915_s15, %s2911_s30  ;;  %p38_p1 = scmp.eq.s32.totalorder %s37_s21, 0 }
   0xf   : > { %p48_p2 = scmp.eq.s32.totalorder %s2919_s16, 0  ;;  %p53_p3 = scmp.ne.s32.totalorder %s2911_s30, %s2907_s29 }
  0x10   : > { %p54_p4 = scmp.eq.s32.totalorder %s3033_s17, 0  ;;  %p355_p7 = scmp.eq.s32.totalorder %s3033_s17, 1 }
  0x11   : > { %s3049_s22 = scalar_select %p38_p1, %s2915_s15, %s40_s20  }
  0x12   : > { %p3051_p5 = por %p48_p2, %p47_p0  ;;  %p3055_p6 = por %p54_p4, %p53_p3 }
  0x13   : > { %3666 = sst [smem:[#allocation14_spill]] %s3049_s22  ;;  %p361_p8 = scmp.eq.s32.totalorder %s2356_s18, 1 }
  0x14   : > { %s3668_s24 = scalar_select %p3055_p6, 1, 0 }
  0x15   : > { %p2708_p10 = scmp.lt.s32.totalorder %s2919_s16, 2  ;;  %p3062_p11 = por %p355_p7, %p47_p0 }
  0x16   : > { %p3066_p12 = por %p361_p8, %p53_p3  ;;  %s3071_s27 = sand.u32 1, %s2915_s15  }
  0x17   : > { %s3669_s25 = scalar_select %p3062_p11, 1, 0 }
  0x18   : > { %s3671_s26 = scalar_select %p3066_p12, 1, 0 }
  0x19   : > { %3670 = sst [smem:[#allocation15_spill]] %s3669_s25  ;;  %s3648_s28 = sshll.u32 %s2919_s16, 7 }
  0x1a   : > { %3672 = sst [smem:[#allocation16_spill]] %s3671_s26  ;;  %s3647_s20 = sshll.u32 %s3071_s27, 3 }
  0x1b   : > { %s3673_s0 = sld [smem:[#allocation17_spill]]  ;;  %s421_s19 = scalar_lea.vmem [#allocation2], %s3647_s20 }
  0x1c   : > { %s428_s29 = sshll.u32 %s421_s19, 4  ;;  %p3086_p13 = pnand %p2708_p10, %p3051_p5  ;;  %s3090_s29 = int_to_ptr.vmem [resolvable:$true] %s428_s29 }
  0x1d   : > { %s418_s21 = scalar_lea.sflag [#allocation3], %s3071_s27 }
  0x1e   : > { %p2797_p3 = pneg %p3086_p13 }
  0x21   : > { %s3080_s22 = scalar_lea.hbm %s3673_s0, %s3648_s28  ;;  %s2800_s20 = scalar_lea.hbm %s3673_s0, 256 }
  0x22   : > { %s2795_s18 = scalar_lea.hbm %s3080_s22, 128  ;;  %p2801_p5 = scmp.lt.s32.totalorder %s3080_s22, %s3673_s0 }
  0x23   : > { %p2796_p2 = scmp.ne.s32.totalorder %s3080_s22, %s2795_s18  ;;  %p2802_p8 = scmp.lt.s32.totalorder %s2800_s20, %s2795_s18 }
  0x25   : > { %p2798_p4 = pnand %p2797_p3, %p2796_p2  ;;  %p2803_p10 = por %p2802_p8, %p2801_p5 }
  0x27   : > { %p2799_p7 = pneg %p2798_p4 }
  0x29   : > { %p2804_p9 = pnand %p2803_p10, %p2799_p7 }
  0x2b   : > { %2807 = shalt.err (!%p2804_p9)
}
  0x2c   : > { %s2808_s14 = scalar_lea.vmem %s3090_s29, 128  ;;  %s2921_s19 = smov [#allocation2]  }
  0x2d   : > { %p2809_p0 = scmp.ne.s32.totalorder %s3090_s29, %s2808_s14  ;;  %s2813_s23 = sshll.u32 %s2921_s19, 4  ;;  %s2814_s23 = int_to_ptr.vmem [resolvable:$false] %s2813_s23 }
  0x2e   : > { %s2815_s25 = scalar_lea.vmem %s2814_s23, 256  ;;  %p2816_p1 = scmp.lt.s32.totalorder %s3090_s29, %s2814_s23 }
  0x2f   : > { %p2811_p2 = pnand %p2809_p0, %p2797_p3  ;;  %p2817_p12 = scmp.lt.s32.totalorder %s2815_s25, %s2808_s14 }
  0x31   : > { %p2812_p4 = pneg %p2811_p2  ;;  %p2818_p11 = por %p2817_p12, %p2816_p1 }
  0x33   : > { %p2819_p5 = pnand %p2818_p11, %p2812_p4 }
  0x35   : > { %2822 = shalt.err (!%p2819_p5)
}
  0x36   : > { %2700 = dma.hbm_to_vmem [thread:$0]  (!%p3086_p13), %s3080_s22, 128, %s3090_s29, %s418_s21  }
  0x37   : > { %p3675_p9 = scmp.lt.s32.totalorder %s2919_s16, 3  ;;  %p3676_p0 = scmp.ge.s32.totalorder %s2919_s16, 1 }
  0x38   : > { %s3678_s14 = sshll.u32 %s2919_s16, 7  ;;  %s3679_s18 = sshll.u32 %s3071_s27, 3 }
  0x39   : > { %p3123_p7 = pnand %p3676_p0, %p3675_p9  ;;  %s3132_s20 = scalar_lea.hbm %s3629_s1, %s3678_s14 }
  0x3a   : > { %s439_s19 = scalar_lea.vmem [#allocation5], %s3679_s18  ;;  %s436_s29 = scalar_lea.sflag [#allocation6], %s3071_s27 }
  0x3b   : > { %s3677_s26 = scalar_select %p3123_p7, 1, 0 }
  0x3c   : > { %s446_s23 = sshll.u32 %s439_s19, 4  ;;  %s2823_s22 = scalar_lea.hbm %s3132_s20, 128  ;;  %s447_s23 = int_to_ptr.vmem [resolvable:$true] %s446_s23 }
  0x3d   : > { %p2824_p11 = scmp.ne.s32.totalorder %s3132_s20, %s2823_s22  ;;  %s2828_s25 = scalar_lea.hbm %s3629_s1, 256 }
  0x3e   : > { %p2829_p8 = scmp.lt.s32.totalorder %s3132_s20, %s3629_s1  ;;  %p2830_p10 = scmp.lt.s32.totalorder %s2828_s25, %s2823_s22 }
  0x3f   : > { %p2826_p12 = pnand %p2824_p11, %p2797_p3 }
  0x40   : > { %p2831_p2 = por %p2830_p10, %p2829_p8 }
  0x41   : > { %p2827_p1 = pneg %p2826_p12 }
  0x43   : > { %p2832_p4 = pnand %p2831_p2, %p2827_p1 }
  0x45   : > { %2835 = shalt.err (!%p2832_p4)
}
  0x46   : > { %s2836_s18 = scalar_lea.vmem %s447_s23, 128  ;;  %s2922_s27 = smov [#allocation5]  }
  0x47   : > { %p2837_p5 = scmp.ne.s32.totalorder %s447_s23, %s2836_s18  ;;  %s2841_s19 = sshll.u32 %s2922_s27, 4  ;;  %s2842_s19 = int_to_ptr.vmem [resolvable:$false] %s2841_s19 }
  0x48   : > { %s2843_s0 = scalar_lea.vmem %s2842_s19, 256  ;;  %p2844_p11 = scmp.lt.s32.totalorder %s447_s23, %s2842_s19 }
  0x49   : > { %p2839_p9 = pnand %p2837_p5, %p2797_p3  ;;  %p2845_p12 = scmp.lt.s32.totalorder %s2843_s0, %s2836_s18 }
  0x4b   : > { %p2840_p0 = pneg %p2839_p9  ;;  %p2846_p6 = por %p2845_p12, %p2844_p11 }
  0x4d   : > { %p2847_p7 = pnand %p2846_p6, %p2840_p0 }
  0x4f   : > { %2850 = shalt.err (!%p2847_p7)
}
  0x50   : > { %2703 = dma.hbm_to_vmem [thread:$0]  (!%p3086_p13), %s3132_s20, 128, %s447_s23, %s436_s29  }
  0x51   : > { %p3680_p1 = scmp.ne.s32.totalorder %s3677_s26, 0 }
  0x52   : > { %s3158_s22 = sand.u32 (!%p3680_p1), 1, %s2911_s30   ;;  %p3681_p6 = scmp.ne.s32.totalorder (!%p3680_p1), %s3668_s24, 0 }
  0x53   : > { %455 = sbr.rel (%p3680_p1) target bundleno = 7056 (0x1b90), region = 76  ;;  %s3161_s21 = sshll.u32 (!%p3680_p1), %s3158_s22, 3 }
  0x54   : > { %s458_s25 = scalar_lea.sflag (!%p3680_p1), [#allocation3], %s3158_s22  ;;  %s461_s14 = scalar_lea.vmem (!%p3680_p1), [#allocation2], %s3161_s21 }
  0x58   : > { %2894 = dma.done.wait (%p3681_p6), %s458_s25, 128  }
  0x59   : > { %2896 = vsyncadd (%p3681_p6), %s458_s25, 4294967168  ;;  %s467_s15 = scalar_lea.sflag [#allocation6], %s3158_s22  ;;  %s470_s26 = scalar_lea.vmem [#allocation5], %s3161_s21 }
  0x5a   : > { %2898 = dma.done.wait (%p3681_p6), %s467_s15, 128  }
  0x5b   : > { %2900 = vsyncadd (%p3681_p6), %s467_s15, 4294967168  ;;  %v2923_v0 = vmov 0.0   ;;  %vm2924_vm0 = vmmov 0   ;;  %v526_v1 = vld [vmem:[%s3630_s2 + $0x10] sm:$0xff]  ;;  %v527_v2 = vld [vmem:[%s3630_s2 + $0x18] sm:$0xff]  ;;  %vm562_vm1 = vcmask 261120  }
  0x5c   : > { %2483 = vmatprep.subr.bf16.mxu0 %v2923_v0  ;;  %2491 = vmatprep.subr.bf16.mxu1 %v2923_v0  ;;  %v524_v3 = vld [vmem:[%s3630_s2] sm:$0xff]  ;;  %v3190_v4 = vpack.c.bf16 %v527_v2, %v526_v1  ;;  %v525_v5 = vld [vmem:[%s3630_s2 + $0x8] sm:$0xff]  ;;  %v522_v7 = vld [vmem:[%s470_s26] sm:$0xff]  ;;  %s2926_s15 = smov 96   ;;  %s2927_s26 = smov 88   ;;  %vm662_vm2 = vcmask 64512  }
  0x5d   : > { %2487 = vmatprep.mubr.msk.bf16.mxu0 %vm2924_vm0, %v2923_v0  ;;  %2495 = vmatprep.mubr.msk.bf16.mxu1 %vm2924_vm0, %v2923_v0  ;;  %v3197_v6 = vpack.c.bf16 %v525_v5, %v524_v3  ;;  %v3199_v8 = vld [vmem:[%s461_s14] sm:$0xff]  ;;  %v523_v9 = vpack.c.bf16 %v522_v7, %v522_v7  ;;  %s2925_s14 = smov 120   ;;  %s3660_s20 = smov 64   ;;  %vm727_vm3 = vcmask 1043456   ;;  %vm1389_vm4 = vcmask 523264  }
  0x5e   : > { %2484 = vmatpush3.bf16.msra.mxu0 %v3190_v4  ;;  %2492 = vmatpush3.bf16.msra.mxu1 %v3190_v4  ;;  %v606_v10 = vpack.c.bf16 %v3199_v8, %v3199_v8  ;;  %v3218_v11 = vld [vmem:[%s3631_s3] ss:$0 sm:$0xff]  ;;  %s2929_s23 = smov 56   ;;  %s2930_s29 = smov 112   ;;  %v532_v62 = vld [vmem:[%s3632_s4 + $0x8] sm:$0xff] }
  0x5f   : > { %2485 = vmatprep.subr.bf16.mxu0 %v2923_v0  ;;  %2493 = vmatprep.subr.bf16.mxu1 %v2923_v0  ;;  %s3659_s28 = smov 80   ;;  %v531_v61 = vld [vmem:[%s3632_s4] sm:$0xff]  ;;  %s3655_s0 = smov 72  }
  0x60   : > { %v535_v63 = vpack.c.bf16 %v532_v62, %v531_v61  ;;  %s3657_s25 = smov 104   ;;  %s3658_s24 = smov 48  }
  0x61   : > { %s2407_s18 = sshll.u32 %s3033_s17, 7  ;;  %s519_s27 = scalar_lea.vmem [#allocation7], %s3161_s21 }
  0x62   : > { %2486 = vmatpush3.bf16.msra.mxu0 %v3197_v6  ;;  %2494 = vmatpush3.bf16.msra.mxu1 %v3197_v6  ;;  %v3274_v1 = vsel %vm727_vm3, %v535_v63, 0  ;;  %v884_v2 = vrot.slane %v535_v63, 4  ;;  %s2936_s17 = smov [#allocation7]  }
  0x63   : > { %2499 = vmatprep.subr.bf16.mxu0 %v2923_v0  ;;  %2505 = vmatprep.subr.bf16.mxu1 %v2923_v0  ;;  %s2855_s21 = sshll.u32 %s2936_s17, 4  ;;  %s2856_s21 = int_to_ptr.vmem [resolvable:$false] %s2855_s21 }
  0x64   : > { %v3279_v3 = vsel %vm727_vm3, %v884_v2, 0 }
  0x65   : > { %2488 = vmatmul.mubr.msk.bf16.vlgmr.msra.gmra.mxu0 %vm562_vm1, %v523_v9  ;;  %2496 = vmatmul.mubr.msk.bf16.vlgmr.msra.gmra.mxu1 %vm562_vm1, %v606_v10 }
  0x66   : > { %2501 = vmatprep.mubr.msk.bf16.mxu0 %vm2924_vm0, %v2923_v0  ;;  %2507 = vmatprep.mubr.msk.bf16.mxu1 %vm2924_vm0, %v2923_v0 }
 0x125   : > { %v3220_v12 = vpop.f32.mrf.mxu0  ;;  %v650_v13 = vpop.f32.mrf.mxu1 }
 0x126   : > { %v651_v14 = vadd.f32 %v3218_v11, %v650_v13 }
 0x127   : > { %v2489_v15 = vpop.f32.mrf.mxu0  ;;  %v2497_v16 = vpop.f32.mrf.mxu1 }
 0x128   : > { %v656_v17 = vadd.f32 %v651_v14, %v3220_v12  ;;  %v3247_v48 = vpack.c.bf16 %v651_v14, %v651_v14 }
 0x129   : > { %v603_v18 = vpop.f32.mrf.mxu0  ;;  %v653_v19 = vpop.f32.mrf.mxu1 }
 0x12a   : > { %v3224_v20 = vpack.c.bf16 %v656_v17, %v656_v17 }
 0x12b   : > { %v2490_v21 = vpop.f32.mrf.mxu0  ;;  %v2498_v22 = vpop.f32.mrf.mxu1 }
 0x12c   : > { %772 = vrot.lane.b32.xlu1 %v3224_v20, %s2925_s14  ;;  %660 = vrot.lane.b32.xlu0 %v3224_v20, %s2926_s15 }
 0x130   : > { %774 = vrot.lane.b32.xlu0 %v3224_v20, %s2927_s26 }
 0x19e   : > { %v661_v23 = vpop.permute.xlu0 %660  ;;  %v773_v27 = vpop.permute.xlu1 %772 }
 0x19f   : > { %v667_v24 = vsel %vm662_vm2, %v661_v23, 0 }
 0x1a0   : > { %2500 = vmatpush3.bf16.xpose.msra.mxu0 %v667_v24 }
 0x1a1   : > { %2511 = vmatprep.subr.bf16.mxu0 %v2923_v0 }
 0x1a2   : > { %v775_v25 = vpop.permute.xlu0 %774 }
 0x1a3   : > { %v780_v26 = vsel %vm662_vm2, %v775_v25, 0 }
 0x1a7   : > { %2502 = vmatmul.mubr.msk.bf16.vlgmr.msra.gmra.mxu0 %vm662_vm2, %v3224_v20 }
 0x1a8   : > { %2512 = vmatpush3.bf16.xpose.msra.mxu0 %v780_v26  ;;  %2513 = vmatprep.mubr.msk.bf16.mxu0 %vm2924_vm0, %v2923_v0 }
 0x1a9   : > { %2523 = vmatprep.subr.bf16.mxu0 %v2923_v0 }
 0x1af   : > { %2514 = vmatmul.mubr.msk.bf16.vlgmr.msra.gmra.mxu0 %vm662_vm2, %v773_v27 }
 0x1b0   : > { %2525 = vmatprep.mubr.msk.bf16.mxu0 %vm2924_vm0, %v2923_v0  ;;  %2524 = vmatpush3.bf16.msra.mxu0 %v3279_v3 }
 0x1b1   : > { %2535 = vmatprep.subr.bf16.mxu0 %v2923_v0 }
 0x267   : > { %v703_v28 = vpop.f32.mrf.mxu0 }
 0x268   : > { %v709_v29 = vsel %vm662_vm2, %v703_v28, -inf }
 0x269   : > { %710 = vmax.xlane.f32.xlu1 %v709_v29  ;;  %v2503_v30 = vpop.f32.mrf.mxu0 }
 0x26b   : > { %v706_v31 = vpop.f32.mrf.mxu0 }
 0x26d   : > { %v2504_v32 = vpop.f32.mrf.mxu0 }
 0x26f   : > { %v816_v33 = vpop.f32.mrf.mxu0 }
 0x270   : > { %v822_v34 = vsel %vm662_vm2, %v816_v33, -inf }
 0x271   : > { %823 = vmax.xlane.f32.xlu0 %v822_v34  ;;  %v2515_v35 = vpop.f32.mrf.mxu0 }
 0x273   : > { %v819_v36 = vpop.f32.mrf.mxu0 }
 0x275   : > { %v2516_v37 = vpop.f32.mrf.mxu0 }
 0x2f2   : > { %v711_v38 = vpop.xlane.xlu1 %710 }
 0x2f3   : > { %v712_v39 = vsub.f32 %v703_v28, %v711_v38 }
 0x2f5   : > { %v713_v40 = vmul.f32 1.442695, %v712_v39 }
 0x2f7   : > { %2755 = vpow2.f32 %v713_v40 }
 0x2fa   : > { %v824_v41 = vpop.xlane.xlu0 %823 }
 0x2fb   : > { %v825_v42 = vsub.f32 %v816_v33, %v824_v41 }
 0x2fd   : > { %v826_v43 = vmul.f32 1.442695, %v825_v42 }
 0x2ff   : > { %2757 = vpow2.f32 %v826_v43 }
 0x304   : > { %v2756_v44 = vpop.eup %2755 }
 0x305   : > { %v715_v45 = vsel %vm662_vm2, %v2756_v44, 0.0 }
 0x306   : > { %716 = vadd.xlane.f32.xlu0 %v715_v45 }
 0x30c   : > { %v2758_v46 = vpop.eup %2757 }
 0x30d   : > { %v828_v47 = vsel %vm662_vm2, %v2758_v46, 0.0 }
 0x30e   : > { %829 = vadd.xlane.f32.xlu1 %v828_v47 }
 0x31c   : > { %722 = vrot.lane.b32.xlu0 %v3247_v48, %s3660_s20  ;;  %s3687_s20 = smov 40  }
 0x31f   : > { %834 = vrot.lane.b32.xlu1 %v3247_v48, %s2929_s23 }
 0x320   : > { %977 = vrot.lane.b32.xlu0 %v3224_v20, %s2930_s29 }
 0x323   : > { %979 = vrot.lane.b32.xlu1 %v3224_v20, %s3659_s28  ;;  %s3688_s28 = sld [smem:[#allocation15_spill]] }
 0x329   : > { %p3690_p3 = scmp.ne.s32.totalorder %s3688_s28, 0 }
 0x38f   : > { %v717_v49 = vpop.xlane.xlu0 %716 }
 0x390   : > { %2759 = vrcp.f32 %v717_v49 }
 0x393   : > { %v723_v50 = vpop.permute.xlu0 %722 }
 0x394   : > { %v729_v51 = vsel %vm727_vm3, %v723_v50, 0 }
 0x395   : > { %2506 = vmatpush3.bf16.msra.mxu1 %v729_v51  ;;  %v533_v51 = vld [vmem:[%s3632_s4 + $0x10] sm:$0xff] }
 0x396   : > { %2517 = vmatprep.subr.bf16.mxu1 %v2923_v0 }
 0x397   : > { %v830_v52 = vpop.xlane.xlu1 %829  ;;  %v978_v22 = vpop.permute.xlu0 %977 }
 0x398   : > { %2761 = vrcp.f32 %v830_v52  ;;  %v534_v52 = vld [vmem:[%s3632_s4 + $0x18] sm:$0xff] }
 0x39b   : > { %v835_v55 = vpop.permute.xlu1 %834 }
 0x39c   : > { %v840_v57 = vsel %vm727_vm3, %v835_v55, 0 }
 0x39d   : > { %v2760_v53 = vpop.eup %2759 }
 0x39e   : > { %v719_v54 = vmul.f32 %v2760_v53, %v2756_v44  ;;  %v536_v53 = vpack.c.bf16 %v534_v52, %v533_v51  ;;  %v551_v51 = vld [vmem:[%s3638_s10 + $0x30] sm:$0xff]  ;;  %v552_v52 = vld [vmem:[%s3638_s10 + $0x38] sm:$0xff] }
 0x39f   : > { %v980_v14 = vpop.permute.xlu1 %979 }
 0x3a0   : > { %v720_v56 = vpack.c.bf16 %v719_v54, %v719_v54  ;;  %v985_v18 = vsel %vm662_vm2, %v980_v14, 0  ;;  %v3321_v54 = vsel %vm727_vm3, %v536_v53, 0 }
 0x3a2   : > { %2508 = vmatmul.mubr.msk.bf16.vlgmr.msra.gmra.mxu1 %vm662_vm2, %v720_v56 }
 0x3a3   : > { %2518 = vmatpush3.bf16.msra.mxu1 %v840_v57  ;;  %2519 = vmatprep.mubr.msk.bf16.mxu1 %vm2924_vm0, %v2923_v0 }
 0x3a4   : > { %2529 = vmatprep.subr.bf16.mxu1 %v2923_v0 }
 0x3a5   : > { %v2762_v58 = vpop.eup %2761 }
 0x3a6   : > { %v832_v59 = vmul.f32 %v2762_v58, %v2758_v46 }
 0x3a8   : > { %v833_v60 = vpack.c.bf16 %v832_v59, %v832_v59 }
 0x3aa   : > { %2520 = vmatmul.mubr.msk.bf16.vlgmr.msra.gmra.mxu1 %vm662_vm2, %v833_v60 }
 0x3ab   : > { %2531 = vmatprep.mubr.msk.bf16.mxu1 %vm2924_vm0, %v2923_v0  ;;  %2530 = vmatpush3.bf16.msra.mxu1 %v3274_v1 }
 0x3ac   : > { %2541 = vmatprep.subr.bf16.mxu1 %v2923_v0 }
 0x462   : > { %v765_v5 = vpop.f32.mrf.mxu1 }
 0x463   : > { %v771_v7 = vpack.c.bf16 %v765_v5, %v765_v5 }
 0x464   : > { %v2509_v9 = vpop.f32.mrf.mxu1 }
 0x465   : > { %2532 = vmatmul.mubr.msk.bf16.vlgmr.msra.gmra.mxu1 %vm662_vm2, %v771_v7 }
 0x466   : > { %v768_v10 = vpop.f32.mrf.mxu1  ;;  %2543 = vmatprep.mubr.msk.bf16.mxu1 %vm2924_vm0, %v2923_v0 }
 0x468   : > { %v2510_v13 = vpop.f32.mrf.mxu1 }
 0x46a   : > { %v876_v15 = vpop.f32.mrf.mxu1 }
 0x46b   : > { %v882_v16 = vpack.c.bf16 %v876_v15, %v876_v15 }
 0x46c   : > { %v2521_v17 = vpop.f32.mrf.mxu1 }
 0x46d   : > { %2526 = vmatmul.mubr.msk.bf16.vlgmr.msra.gmra.mxu0 %vm662_vm2, %v882_v16  ;;  %v1247_v17 = vrot.slane %v536_v53, 4  ;;  %v549_v53 = vld [vmem:[%s3638_s10 + $0x20] sm:$0xff] }
 0x46e   : > { %2536 = vmatpush3.bf16.xpose.msra.mxu0 %v985_v18  ;;  %v879_v19 = vpop.f32.mrf.mxu1  ;;  %2537 = vmatprep.mubr.msk.bf16.mxu0 %vm2924_vm0, %v2923_v0 }
 0x46f   : > { %2547 = vmatprep.subr.bf16.mxu0 %v2923_v0 }
 0x470   : > { %v2522_v21 = vpop.f32.mrf.mxu1 }
 0x475   : > { %2538 = vmatmul.mubr.msk.bf16.vlgmr.msra.gmra.mxu0 %vm662_vm2, %v978_v22 }
 0x476   : > { %2549 = vmatprep.mubr.msk.bf16.mxu0 %vm2924_vm0, %v2923_v0  ;;  %2548 = vmatpush3.bf16.msra.mxu0 %v3321_v54 }
 0x477   : > { %2559 = vmatprep.subr.bf16.mxu0 %v2923_v0 }
 0x525   : > { %v971_v23 = vpop.f32.mrf.mxu1 }
 0x527   : > { %v2533_v24 = vpop.f32.mrf.mxu1 }
 0x529   : > { %v974_v25 = vpop.f32.mrf.mxu1 }
 0x52b   : > { %v2534_v26 = vpop.f32.mrf.mxu1 }
 0x52d   : > { %v925_v27 = vpop.f32.mrf.mxu0 }
 0x52e   : > { %v3294_v28 = vadd.f32 %v971_v23, %v925_v27 }
 0x52f   : > { %v2527_v29 = vpop.f32.mrf.mxu0 }
 0x531   : > { %v928_v30 = vpop.f32.mrf.mxu0 }
 0x533   : > { %v2528_v31 = vpop.f32.mrf.mxu0 }
 0x535   : > { %v1021_v32 = vpop.f32.mrf.mxu0 }
 0x536   : > { %v1027_v33 = vsel %vm662_vm2, %v1021_v32, -inf }
 0x537   : > { %1028 = vmax.xlane.f32.xlu1 %v1027_v33  ;;  %v2539_v34 = vpop.f32.mrf.mxu0 }
 0x539   : > { %v1024_v35 = vpop.f32.mrf.mxu0 }
 0x53b   : > { %v2540_v36 = vpop.f32.mrf.mxu0 }
 0x548   : > { %1137 = vrot.lane.b32.xlu1 %v3224_v20, %s3655_s0  ;;  %s3656_s0 = smov 40  }
 0x54c   : > { %1135 = vrot.lane.b32.xlu1 %v3224_v20, %s3657_s25 }
 0x5c0   : > { %v1029_v37 = vpop.xlane.xlu1 %1028 }
 0x5c1   : > { %v1030_v38 = vsub.f32 %v1021_v32, %v1029_v37  ;;  %v3349_v32 = vld [vmem:[%s3633_s5] ss:$0 sm:$0xff] }
 0x5c3   : > { %v1031_v39 = vmul.f32 1.442695, %v1030_v38 }
 0x5c4   : > { %v1138_v46 = vpop.permute.xlu1 %1137 }
 0x5c5   : > { %2763 = vpow2.f32 %v1031_v39  ;;  %v1143_v49 = vsel %vm662_vm2, %v1138_v46, 0  ;;  %v541_v46 = vld [vmem:[%s3636_s8 + $0x18] sm:$0xff] }
 0x5c8   : > { %v1136_v50 = vpop.permute.xlu1 %1135 }
 0x5d2   : > { %v2764_v40 = vpop.eup %2763 }
 0x5d3   : > { %v1033_v41 = vsel %vm662_vm2, %v2764_v40, 0.0 }
 0x5d4   : > { %1034 = vadd.xlane.f32.xlu0 %v1033_v41 }
 0x5ea   : > { %1039 = vrot.lane.b32.xlu0 %v3247_v48, %s3658_s24  ;;  %s3689_s24 = sld [smem:[#allocation18_spill]] }
 0x65d   : > { %v1035_v42 = vpop.xlane.xlu0 %1034 }
 0x65e   : > { %2765 = vrcp.f32 %v1035_v42 }
 0x661   : > { %v1040_v43 = vpop.permute.xlu0 %1039 }
 0x662   : > { %v1045_v44 = vsel %vm727_vm3, %v1040_v43, 0 }
 0x663   : > { %2542 = vmatpush3.bf16.msra.mxu1 %v1045_v44 }
 0x664   : > { %2553 = vmatprep.subr.bf16.mxu1 %v2923_v0 }
 0x66b   : > { %v2766_v20 = vpop.eup %2765 }
 0x66c   : > { %v1037_v45 = vmul.f32 %v2766_v20, %v2764_v40 }
 0x66e   : > { %v1038_v47 = vpack.c.bf16 %v1037_v45, %v1037_v45  ;;  %v540_v45 = vld [vmem:[%s3636_s8 + $0x10] sm:$0xff] }
 0x670   : > { %2544 = vmatmul.mubr.msk.bf16.vlgmr.msra.gmra.mxu1 %vm662_vm2, %v1038_v47  ;;  %v538_v47 = vld [vmem:[%s3636_s8] sm:$0xff] }
 0x671   : > { %2554 = vmatpush3.bf16.xpose.msra.mxu1 %v1143_v49  ;;  %2555 = vmatprep.mubr.msk.bf16.mxu1 %vm2924_vm0, %v2923_v0  ;;  %v539_v49 = vld [vmem:[%s3636_s8 + $0x8] sm:$0xff] }
 0x672   : > { %2565 = vmatprep.subr.bf16.mxu1 %v2923_v0 }
 0x678   : > { %2556 = vmatmul.mubr.msk.bf16.vlgmr.msra.gmra.mxu1 %vm662_vm2, %v1136_v50  ;;  %v3370_v50 = vpack.c.bf16 %v539_v49, %v538_v47 }
 0x679   : > { %2567 = vmatprep.mubr.msk.bf16.mxu1 %vm2924_vm0, %v2923_v0 }
 0x730   : > { %v1081_v55 = vpop.f32.mrf.mxu1 }
 0x731   : > { %v1087_v56 = vpack.c.bf16 %v1081_v55, %v1081_v55  ;;  %v3384_v55 = vpack.c.bf16 %v552_v52, %v551_v51 }
 0x732   : > { %v2545_v57 = vpop.f32.mrf.mxu1 }
 0x733   : > { %2550 = vmatmul.mubr.msk.bf16.vlgmr.msra.gmra.mxu0 %vm662_vm2, %v1087_v56  ;;  %v550_v56 = vld [vmem:[%s3638_s10 + $0x28] sm:$0xff] }
 0x734   : > { %v1084_v58 = vpop.f32.mrf.mxu1  ;;  %2561 = vmatprep.mubr.msk.bf16.mxu0 %vm2924_vm0, %v2923_v0  ;;  %v3390_v57 = vpack.c.bf16 %v550_v56, %v549_v53 }
 0x736   : > { %v2546_v59 = vpop.f32.mrf.mxu1 }
 0x738   : > { %v1179_v60 = vpop.f32.mrf.mxu1 }
 0x739   : > { %v1185_v61 = vsel %vm662_vm2, %v1179_v60, -inf }
 0x73a   : > { %1186 = vmax.xlane.f32.xlu0 %v1185_v61  ;;  %v2557_v62 = vpop.f32.mrf.mxu1 }
 0x73b   : > { %v3398_v62 = vld [vmem:[%s3634_s6] ss:$0 sm:$0xff] }
 0x73c   : > { %v1182_v63 = vpop.f32.mrf.mxu1 }
 0x73e   : > { %v2558_v2 = vpop.f32.mrf.mxu1 }
 0x73f   : > { %v3403_v2 = vld [vmem:[%s3635_s7] ss:$0 sm:$0xff] }
 0x750   : > { %1197 = vrot.lane.b32.xlu0 %v3247_v48, %s3656_s0  ;;  %v3336_v48 = vsel %vm727_vm3, %v1247_v17, 0  ;;  %s2263_s0 = sshll.u32 %s519_s27, 4  ;;  %s2264_s0 = int_to_ptr.vmem [resolvable:$true] %s2263_s0 }
 0x751   : > { %2566 = vmatpush3.bf16.msra.mxu1 %v3336_v48  ;;  %p2858_p10 = scmp.lt.s32.totalorder %s2264_s0, %s2856_s21 }
 0x752   : > { %2579 = vmatprep.subr.bf16.mxu1 %v2923_v0 }
 0x7c3   : > { %v1187_v5 = vpop.xlane.xlu0 %1186 }
 0x7c4   : > { %v1188_v7 = vsub.f32 %v1179_v60, %v1187_v5 }
 0x7c6   : > { %v1189_v9 = vmul.f32 1.442695, %v1188_v7 }
 0x7c7   : > { %v1198_v10 = vpop.permute.xlu0 %1197 }
 0x7c8   : > { %2767 = vpow2.f32 %v1189_v9  ;;  %v1203_v13 = vsel %vm727_vm3, %v1198_v10, 0  ;;  %v547_v10 = vld [vmem:[%s3638_s10 + $0x10] sm:$0xff] }
 0x7c9   : > { %2560 = vmatpush3.bf16.msra.mxu0 %v1203_v13  ;;  %v548_v13 = vld [vmem:[%s3638_s10 + $0x18] sm:$0xff] }
 0x7ca   : > { %2571 = vmatprep.subr.bf16.mxu0 %v2923_v0 }
 0x7d5   : > { %v2768_v14 = vpop.eup %2767 }
 0x7d6   : > { %v1191_v15 = vsel %vm662_vm2, %v2768_v14, 0.0 }
 0x7d7   : > { %1192 = vadd.xlane.f32.xlu1 %v1191_v15 }
 0x7f3   : > { %v1128_v16 = vpop.f32.mrf.mxu0 }
 0x7f4   : > { %v1134_v18 = vadd.f32 %v1128_v16, %v3294_v28  ;;  %v3437_v16 = vld [vmem:[%s3637_s9] ss:$0 sm:$0xff] }
 0x7f5   : > { %v2551_v19 = vpop.f32.mrf.mxu0 }
 0x7f7   : > { %v1131_v21 = vpop.f32.mrf.mxu0 }
 0x7f9   : > { %v2552_v22 = vpop.f32.mrf.mxu0 }
 0x860   : > { %v1193_v23 = vpop.xlane.xlu1 %1192 }
 0x861   : > { %2769 = vrcp.f32 %v1193_v23 }
 0x86e   : > { %v2770_v24 = vpop.eup %2769 }
 0x86f   : > { %v1195_v25 = vmul.f32 %v2770_v24, %v2768_v14  ;;  %v3420_v14 = vpack.c.bf16 %v548_v13, %v547_v10 }
 0x871   : > { %v1196_v26 = vpack.c.bf16 %v1195_v25, %v1195_v25  ;;  %v3446_v25 = vld [vmem:[%s3639_s11] ss:$0 sm:$0xff] }
 0x873   : > { %2562 = vmatmul.mubr.msk.bf16.vlgmr.msra.gmra.mxu0 %vm662_vm2, %v1196_v26 }
 0x874   : > { %2575 = vmatprep.mubr.msk.bf16.mxu0 %vm2924_vm0, %v2923_v0 }
 0x933   : > { %v1239_v27 = vpop.f32.mrf.mxu0 }
 0x934   : > { %v1245_v28 = vpack.c.bf16 %v1239_v27, %v1239_v27 }
 0x935   : > { %v2563_v29 = vpop.f32.mrf.mxu0 }
 0x936   : > { %2568 = vmatmul.mubr.msk.bf16.vlgmr.msra.gmra.mxu1 %vm662_vm2, %v1245_v28 }
 0x937   : > { %v1242_v30 = vpop.f32.mrf.mxu0  ;;  %2587 = vmatprep.mubr.msk.bf16.mxu1 %vm2924_vm0, %v2923_v0  ;;  %2580 = vmatpush3.bf16.msra.mxu1 %v3384_v55 }
 0x938   : > { %2581 = vmatprep.subr.bf16.mxu1 %v2923_v0 }
 0x939   : > { %v2564_v31 = vpop.f32.mrf.mxu0 }
 0x93b   : > { %2582 = vmatpush3.bf16.msra.mxu1 %v3390_v57 }
 0x93c   : > { %2583 = vmatprep.subr.bf16.mxu1 %v2923_v0 }
 0x93f   : > { %2584 = vmatpush3.bf16.msra.mxu1 %v3420_v14 }
 0x940   : > { %2585 = vmatprep.subr.bf16.mxu1 %v2923_v0 }
 0x9f6   : > { %v1288_v33 = vpop.f32.mrf.mxu1 }
 0x9f7   : > { %v1294_v34 = vadd.f32 %v1288_v33, %v1134_v18 }
 0x9f8   : > { %v2569_v35 = vpop.f32.mrf.mxu1 }
 0x9f9   : > { %v1301_v36 = vadd.f32 %v3349_v32, %v1294_v34 }
 0x9fa   : > { %v1291_v37 = vpop.f32.mrf.mxu1 }
 0x9fb   : > { %v1302_v38 = vadd.f32 %v1301_v36, %v3199_v8  ;;  %v3361_v8 = vpack.c.bf16 %v541_v46, %v540_v45 }
 0x9fc   : > { %v2570_v39 = vpop.f32.mrf.mxu1 }
 0x9fd   : > { %v1303_v40 = vsel %vm562_vm1, %v1302_v38, 0.0  ;;  %2572 = vmatpush3.bf16.msra.mxu0 %v3361_v8 }
 0x9fe   : > { %1304 = vadd.xlane.f32.xlu1 %v1303_v40  ;;  %2573 = vmatprep.subr.bf16.mxu0 %v2923_v0 }
 0xa01   : > { %2574 = vmatpush3.bf16.msra.mxu0 %v3370_v50 }
 0xa02   : > { %2591 = vmatprep.subr.bf16.mxu0 %v2923_v0 }
 0xa87   : > { %v1305_v41 = vpop.xlane.xlu1 %1304 }
 0xa88   : > { %v1307_v42 = vmul.f32 0.03125, %v1305_v41 }
 0xa8a   : > { %v1308_v43 = vsub.f32 %v1302_v38, %v1307_v42 }
 0xa8c   : > { %v1309_v44 = vmul.f32 %v1308_v43, %v1308_v43 }
 0xa8e   : > { %v1310_v20 = vsel %vm562_vm1, %v1309_v44, 0.0 }
 0xa8f   : > { %1311 = vadd.xlane.f32.xlu1 %v1310_v20  ;;  %v3459_v20 = vld [vmem:[%s3641_s13] ss:$0 sm:$0xff] }
 0xb18   : > { %v1312_v58 = vpop.xlane.xlu1 %1311 }
 0xb19   : > { %v1313_v59 = vmul.f32 0.03125, %v1312_v58 }
 0xb1b   : > { %v1314_v60 = vadd.f32 1e-05, %v1313_v59 }
 0xb1d   : > { %2771 = vrsqrt.f32 %v1314_v60 }
 0xb2a   : > { %v2772_v61 = vpop.eup %2771 }
 0xb2b   : > { %v1316_v63 = vmul.f32 %v2772_v61, %v1308_v43  ;;  %v3454_v43 = vld [vmem:[%s3640_s12] ss:$0 sm:$0xff] }
 0xb2d   : > { %v1323_v5 = vmul.f32 %v3398_v62, %v1316_v63 }
 0xb2f   : > { %v1330_v7 = vadd.f32 %v3403_v2, %v1323_v5 }
 0xb31   : > { %v1331_v9 = vpack.c.bf16 %v1330_v7, %v1330_v7 }
 0xb33   : > { %2576 = vmatmul.mubr.msk.bf16.vlgmr.msra.gmra.mxu0 %vm562_vm1, %v1331_v9 }
 0xb34   : > { %2592 = vmatpush3.bf16.msra.mxu0 %v3190_v4  ;;  %2595 = vmatprep.mubr.msk.bf16.mxu0 %vm2924_vm0, %v2923_v0  ;;  %v545_v4 = vld [vmem:[%s3638_s10] sm:$0xff] }
 0xb35   : > { %2593 = vmatprep.subr.bf16.mxu0 %v2923_v0 }
 0xb38   : > { %2594 = vmatpush3.bf16.msra.mxu0 %v3197_v6  ;;  %v546_v6 = vld [vmem:[%s3638_s10 + $0x8] sm:$0xff] }
 0xb39   : > { %2599 = vmatprep.subr.bf16.mxu0 %v2923_v0  ;;  %v3430_v15 = vpack.c.bf16 %v546_v6, %v545_v4 }
 0xb3b   : > { %2586 = vmatpush3.bf16.msra.mxu1 %v3430_v15 }
 0xb3c   : > { %2605 = vmatprep.subr.bf16.mxu1 %v2923_v0 }
 0xbf3   : > { %v1375_v17 = vpop.f32.mrf.mxu0 }
 0xbf4   : > { %v1376_v18 = vadd.f32 %v3437_v16, %v1375_v17 }
 0xbf5   : > { %v2577_v19 = vpop.f32.mrf.mxu0 }
 0xbf6   : > { %v1381_v21 = vmax.f32 %v1376_v18, 0.0 }
 0xbf7   : > { %v1378_v22 = vpop.f32.mrf.mxu0 }
 0xbf8   : > { %v1382_v23 = vpack.c.bf16 %v1381_v21, %v1381_v21 }
 0xbf9   : > { %v2578_v24 = vpop.f32.mrf.mxu0 }
 0xbfa   : > { %2588 = vmatmul.mubr.msk.bf16.vlgmr.msra.gmra.mxu1 %vm1389_vm4, %v1382_v23 }
 0xbfb   : > { %2607 = vmatprep.mubr.msk.bf16.mxu1 %vm2924_vm0, %v2923_v0 }
 0xcba   : > { %v1427_v26 = vpop.f32.mrf.mxu1 }
 0xcbb   : > { %v1428_v27 = vadd.f32 %v3446_v25, %v1427_v26 }
 0xcbc   : > { %v2589_v28 = vpop.f32.mrf.mxu1 }
 0xcbd   : > { %v1433_v29 = vadd.f32 %v1428_v27, %v1330_v7 }
 0xcbe   : > { %v1430_v30 = vpop.f32.mrf.mxu1 }
 0xcbf   : > { %v1434_v31 = vsel %vm562_vm1, %v1433_v29, 0.0 }
 0xcc0   : > { %1435 = vadd.xlane.f32.xlu1 %v1434_v31  ;;  %v2590_v33 = vpop.f32.mrf.mxu1 }
 0xd49   : > { %v1436_v34 = vpop.xlane.xlu1 %1435 }
 0xd4a   : > { %v1437_v35 = vmul.f32 0.03125, %v1436_v34 }
 0xd4c   : > { %v1438_v36 = vsub.f32 %v1433_v29, %v1437_v35 }
 0xd4e   : > { %v1439_v37 = vmul.f32 %v1438_v36, %v1438_v36 }
 0xd50   : > { %v1440_v38 = vsel %vm562_vm1, %v1439_v37, 0.0 }
 0xd51   : > { %1441 = vadd.xlane.f32.xlu1 %v1440_v38 }
 0xdda   : > { %v1442_v39 = vpop.xlane.xlu1 %1441 }
 0xddb   : > { %v1443_v40 = vmul.f32 0.03125, %v1442_v39 }
 0xddd   : > { %v1444_v41 = vadd.f32 1e-05, %v1443_v40 }
 0xddf   : > { %2773 = vrsqrt.f32 %v1444_v41 }
 0xdec   : > { %v2774_v42 = vpop.eup %2773 }
 0xded   : > { %v1446_v44 = vmul.f32 %v2774_v42, %v1438_v36 }
 0xdef   : > { %v1453_v45 = vmul.f32 %v3454_v43, %v1446_v44 }
 0xdf1   : > { %v3463_v46 = vadd.f32 %v3459_v20, %v1453_v45 }
 0xdf3   : > { %v1461_v47 = vpack.c.bf16 %v3463_v46, %v3463_v46 }
 0xdf5   : > { %2596 = vmatmul.mubr.msk.bf16.vlgmr.msra.gmra.mxu0 %vm562_vm1, %v1461_v47 }
 0xdf6   : > { %2601 = vmatprep.mubr.msk.bf16.mxu0 %vm2924_vm0, %v2923_v0 }
 0xeb5   : > { %v1499_v49 = vpop.f32.mrf.mxu0 }
 0xeb6   : > { %v1500_v51 = vadd.f32 %v3218_v11, %v1499_v49 }
 0xeb7   : > { %v2597_v52 = vpop.f32.mrf.mxu0 }
 0xeb8   : > { %v1505_v53 = vadd.f32 %v1500_v51, %v3220_v12 }
 0xeb9   : > { %v1502_v56 = vpop.f32.mrf.mxu0 }
 0xeba   : > { %v3472_v58 = vpack.c.bf16 %v1505_v53, %v1505_v53 }
 0xebb   : > { %v2598_v59 = vpop.f32.mrf.mxu0 }
 0xebc   : > { %1621 = vrot.lane.b32.xlu0 %v3472_v58, %s2927_s26  ;;  %1509 = vrot.lane.b32.xlu1 %v3472_v58, %s2926_s15  ;;  %s3683_s15 = smov 80   ;;  %s3684_s26 = smov 48  }
 0xec0   : > { %1619 = vrot.lane.b32.xlu0 %v3472_v58, %s2925_s14  ;;  %s3682_s14 = smov 64  }
 0xf2e   : > { %v1510_v60 = vpop.permute.xlu1 %1509  ;;  %v1622_v11 = vpop.permute.xlu0 %1621 }
 0xf2f   : > { %v1515_v61 = vsel %vm662_vm2, %v1510_v60, 0  ;;  %v1627_v12 = vsel %vm662_vm2, %v1622_v11, 0 }
 0xf30   : > { %2600 = vmatpush3.bf16.xpose.msra.mxu0 %v1515_v61 }
 0xf31   : > { %2611 = vmatprep.subr.bf16.mxu0 %v2923_v0 }
 0xf32   : > { %v1620_v63 = vpop.permute.xlu0 %1619 }
 0xf37   : > { %2602 = vmatmul.mubr.msk.bf16.vlgmr.msra.gmra.mxu0 %vm662_vm2, %v3472_v58 }
 0xf38   : > { %2612 = vmatpush3.bf16.xpose.msra.mxu0 %v1627_v12  ;;  %2613 = vmatprep.mubr.msk.bf16.mxu0 %vm2924_vm0, %v2923_v0 }
 0xf39   : > { %2623 = vmatprep.subr.bf16.mxu0 %v2923_v0 }
 0xf3f   : > { %2614 = vmatmul.mubr.msk.bf16.vlgmr.msra.gmra.mxu0 %vm662_vm2, %v1620_v63 }
 0xf40   : > { %2624 = vmatpush3.bf16.msra.mxu0 %v3279_v3  ;;  %2625 = vmatprep.mubr.msk.bf16.mxu0 %vm2924_vm0, %v2923_v0  ;;  %v3495_v3 = vpack.c.bf16 %v1500_v51, %v1500_v51 }
 0xf41   : > { %2635 = vmatprep.subr.bf16.mxu0 %v2923_v0 }
 0xff7   : > { %v1551_v5 = vpop.f32.mrf.mxu0 }
 0xff8   : > { %v1557_v7 = vsel %vm662_vm2, %v1551_v5, -inf }
 0xff9   : > { %1558 = vmax.xlane.f32.xlu0 %v1557_v7  ;;  %v2603_v9 = vpop.f32.mrf.mxu0 }
 0xffb   : > { %v1554_v10 = vpop.f32.mrf.mxu0 }
 0xffd   : > { %v2604_v13 = vpop.f32.mrf.mxu0 }
 0xfff   : > { %v1663_v4 = vpop.f32.mrf.mxu0 }
0x1000   : > { %v1669_v6 = vsel %vm662_vm2, %v1663_v4, -inf }
0x1001   : > { %1670 = vmax.xlane.f32.xlu1 %v1669_v6  ;;  %v2615_v17 = vpop.f32.mrf.mxu0 }
0x1003   : > { %v1666_v18 = vpop.f32.mrf.mxu0 }
0x1005   : > { %v2616_v19 = vpop.f32.mrf.mxu0 }
0x1012   : > { %1681 = vrot.lane.b32.xlu1 %v3495_v3, %s2929_s23  ;;  %s3685_s23 = smov 104  }
0x1016   : > { %1816 = vrot.lane.b32.xlu1 %v3472_v58, %s2930_s29  ;;  %s3686_s29 = smov 72  }
0x1082   : > { %v1559_v21 = vpop.xlane.xlu0 %1558 }
0x1083   : > { %v1560_v22 = vsub.f32 %v1551_v5, %v1559_v21 }
0x1085   : > { %v1561_v23 = vmul.f32 1.442695, %v1560_v22 }
0x1087   : > { %2775 = vpow2.f32 %v1561_v23 }
0x108a   : > { %v1671_v24 = vpop.xlane.xlu1 %1670 }
0x108b   : > { %v1672_v26 = vsub.f32 %v1663_v4, %v1671_v24 }
0x108d   : > { %v1673_v27 = vmul.f32 1.442695, %v1672_v26 }
0x108e   : > { %v1682_v39 = vpop.permute.xlu1 %1681 }
0x108f   : > { %2777 = vpow2.f32 %v1673_v27  ;;  %v1687_v41 = vsel %vm727_vm3, %v1682_v39, 0 }
0x1092   : > { %v1817_v63 = vpop.permute.xlu1 %1816 }
0x1094   : > { %v2776_v28 = vpop.eup %2775 }
0x1095   : > { %v1563_v29 = vsel %vm662_vm2, %v2776_v28, 0.0 }
0x1096   : > { %1564 = vadd.xlane.f32.xlu0 %v1563_v29 }
0x109c   : > { %v2778_v30 = vpop.eup %2777 }
0x109d   : > { %v1675_v31 = vsel %vm662_vm2, %v2778_v30, 0.0 }
0x109e   : > { %1676 = vadd.xlane.f32.xlu0 %v1675_v31 }
0x10b4   : > { %1570 = vrot.lane.b32.xlu0 %v3495_v3, %s3682_s14  ;;  %s2261_s14 = scalar_lea.hbm %s3689_s24, %s2407_s18 }
0x10b8   : > { %1818 = vrot.lane.b32.xlu0 %v3472_v58, %s3683_s15  ;;  %s2250_s15 = scalar_lea.sflag [#allocation4], %s3158_s22 }
0x111f   : > { %v1565_v33 = vpop.xlane.xlu0 %1564 }
0x1120   : > { %2779 = vrcp.f32 %v1565_v33 }
0x1127   : > { %v1677_v34 = vpop.xlane.xlu0 %1676 }
0x1128   : > { %2781 = vrcp.f32 %v1677_v34 }
0x112b   : > { %v1571_v35 = vpop.permute.xlu0 %1570 }
0x112c   : > { %v1576_v36 = vsel %vm727_vm3, %v1571_v35, 0 }
0x112d   : > { %v2780_v37 = vpop.eup %2779  ;;  %2606 = vmatpush3.bf16.msra.mxu1 %v1576_v36 }
0x112e   : > { %2617 = vmatprep.subr.bf16.mxu1 %v2923_v0  ;;  %v1567_v38 = vmul.f32 %v2780_v37, %v2776_v28 }
0x112f   : > { %v1819_v56 = vpop.permute.xlu0 %1818 }
0x1130   : > { %v1568_v40 = vpack.c.bf16 %v1567_v38, %v1567_v38 }
0x1132   : > { %2608 = vmatmul.mubr.msk.bf16.vlgmr.msra.gmra.mxu1 %vm662_vm2, %v1568_v40 }
0x1133   : > { %2618 = vmatpush3.bf16.msra.mxu1 %v1687_v41  ;;  %2619 = vmatprep.mubr.msk.bf16.mxu1 %vm2924_vm0, %v2923_v0 }
0x1134   : > { %2629 = vmatprep.subr.bf16.mxu1 %v2923_v0 }
0x1135   : > { %v2782_v42 = vpop.eup %2781 }
0x1136   : > { %v1679_v44 = vmul.f32 %v2782_v42, %v2778_v30 }
0x1138   : > { %v1680_v45 = vpack.c.bf16 %v1679_v44, %v1679_v44 }
0x113a   : > { %2620 = vmatmul.mubr.msk.bf16.vlgmr.msra.gmra.mxu1 %vm662_vm2, %v1680_v45 }
0x113b   : > { %2630 = vmatpush3.bf16.msra.mxu1 %v3274_v1  ;;  %2631 = vmatprep.mubr.msk.bf16.mxu1 %vm2924_vm0, %v2923_v0  ;;  %v1824_v1 = vsel %vm662_vm2, %v1819_v56, 0 }
0x113c   : > { %2641 = vmatprep.subr.bf16.mxu1 %v2923_v0 }
0x11f2   : > { %v1612_v47 = vpop.f32.mrf.mxu1 }
0x11f3   : > { %v1618_v49 = vpack.c.bf16 %v1612_v47, %v1612_v47 }
0x11f4   : > { %v2609_v51 = vpop.f32.mrf.mxu1 }
0x11f5   : > { %2632 = vmatmul.mubr.msk.bf16.vlgmr.msra.gmra.mxu1 %vm662_vm2, %v1618_v49 }
0x11f6   : > { %v1615_v52 = vpop.f32.mrf.mxu1  ;;  %2643 = vmatprep.mubr.msk.bf16.mxu1 %vm2924_vm0, %v2923_v0 }
0x11f8   : > { %v2610_v53 = vpop.f32.mrf.mxu1 }
0x11fa   : > { %v1723_v59 = vpop.f32.mrf.mxu1 }
0x11fb   : > { %v1729_v60 = vpack.c.bf16 %v1723_v59, %v1723_v59 }
0x11fc   : > { %v2621_v61 = vpop.f32.mrf.mxu1 }
0x11fd   : > { %2626 = vmatmul.mubr.msk.bf16.vlgmr.msra.gmra.mxu0 %vm662_vm2, %v1729_v60 }
0x11fe   : > { %2636 = vmatpush3.bf16.xpose.msra.mxu0 %v1824_v1  ;;  %v1726_v11 = vpop.f32.mrf.mxu1  ;;  %2637 = vmatprep.mubr.msk.bf16.mxu0 %vm2924_vm0, %v2923_v0 }
0x11ff   : > { %2647 = vmatprep.subr.bf16.mxu0 %v2923_v0 }
0x1200   : > { %v2622_v12 = vpop.f32.mrf.mxu1 }
0x1205   : > { %2638 = vmatmul.mubr.msk.bf16.vlgmr.msra.gmra.mxu0 %vm662_vm2, %v1817_v63 }
0x1206   : > { %2648 = vmatpush3.bf16.msra.mxu0 %v3321_v54  ;;  %2649 = vmatprep.mubr.msk.bf16.mxu0 %vm2924_vm0, %v2923_v0 }
0x1207   : > { %2659 = vmatprep.subr.bf16.mxu0 %v2923_v0 }
0x12b5   : > { %v1810_v5 = vpop.f32.mrf.mxu1 }
0x12b7   : > { %v2633_v7 = vpop.f32.mrf.mxu1 }
0x12b9   : > { %v1813_v9 = vpop.f32.mrf.mxu1 }
0x12bb   : > { %v2634_v10 = vpop.f32.mrf.mxu1 }
0x12bd   : > { %v1767_v13 = vpop.f32.mrf.mxu0 }
0x12be   : > { %v1811_v4 = vadd.f32 %v1810_v5, %v1767_v13 }
0x12bf   : > { %v2627_v6 = vpop.f32.mrf.mxu0 }
0x12c1   : > { %v1770_v17 = vpop.f32.mrf.mxu0 }
0x12c3   : > { %v2628_v18 = vpop.f32.mrf.mxu0 }
0x12c5   : > { %v1860_v19 = vpop.f32.mrf.mxu0 }
0x12c6   : > { %v1866_v21 = vsel %vm662_vm2, %v1860_v19, -inf }
0x12c7   : > { %1867 = vmax.xlane.f32.xlu0 %v1866_v21  ;;  %v2639_v22 = vpop.f32.mrf.mxu0 }
0x12c9   : > { %v1863_v54 = vpop.f32.mrf.mxu0 }
0x12cb   : > { %v2640_v23 = vpop.f32.mrf.mxu0 }
0x12dd   : > { %1878 = vrot.lane.b32.xlu0 %v3495_v3, %s3684_s26  ;;  %s2851_s26 = scalar_lea.vmem %s2264_s0, 128 }
0x12de   : > { %p2852_p13 = scmp.ne.s32.totalorder %s2264_s0, %s2851_s26 }
0x12e0   : > { %p2853_p7 = pnand %p2852_p13, %p3690_p3 }
0x12e1   : > { %1971 = vrot.lane.b32.xlu0 %v3472_v58, %s3685_s23  ;;  %s2857_s23 = scalar_lea.vmem %s2856_s21, 256 }
0x12e2   : > { %p2854_p8 = pneg %p2853_p7  ;;  %p2859_p2 = scmp.lt.s32.totalorder %s2857_s23, %s2851_s26 }
0x12e4   : > { %p2860_p4 = por %p2859_p2, %p2858_p10 }
0x12e6   : > { %p2861_p5 = pnand %p2860_p4, %p2854_p8 }
0x1350   : > { %v1868_v24 = vpop.xlane.xlu0 %1867 }
0x1351   : > { %v1869_v26 = vsub.f32 %v1860_v19, %v1868_v24 }
0x1353   : > { %v1870_v27 = vmul.f32 1.442695, %v1869_v26 }
0x1354   : > { %v1879_v28 = vpop.permute.xlu0 %1878 }
0x1355   : > { %2783 = vpow2.f32 %v1870_v27  ;;  %v1884_v29 = vsel %vm727_vm3, %v1879_v28, 0 }
0x1356   : > { %2642 = vmatpush3.bf16.msra.mxu1 %v1884_v29 }
0x1357   : > { %2653 = vmatprep.subr.bf16.mxu1 %v2923_v0 }
0x1358   : > { %v1972_v39 = vpop.permute.xlu0 %1971 }
0x1362   : > { %v2784_v30 = vpop.eup %2783 }
0x1363   : > { %v1872_v31 = vsel %vm662_vm2, %v2784_v30, 0.0 }
0x1364   : > { %1873 = vadd.xlane.f32.xlu1 %v1872_v31 }
0x1375   : > { %1973 = vrot.lane.b32.xlu1 %v3472_v58, %s3686_s29 }
0x13ed   : > { %v1874_v33 = vpop.xlane.xlu1 %1873 }
0x13ee   : > { %2785 = vrcp.f32 %v1874_v33 }
0x13f1   : > { %v1974_v36 = vpop.permute.xlu1 %1973 }
0x13f2   : > { %v1979_v38 = vsel %vm662_vm2, %v1974_v36, 0 }
0x13fb   : > { %v2786_v34 = vpop.eup %2785 }
0x13fc   : > { %v1876_v35 = vmul.f32 %v2786_v34, %v2784_v30 }
0x13fe   : > { %v1877_v37 = vpack.c.bf16 %v1876_v35, %v1876_v35 }
0x1400   : > { %2644 = vmatmul.mubr.msk.bf16.vlgmr.msra.gmra.mxu1 %vm662_vm2, %v1877_v37 }
0x1401   : > { %2654 = vmatpush3.bf16.xpose.msra.mxu1 %v1979_v38  ;;  %2655 = vmatprep.mubr.msk.bf16.mxu1 %vm2924_vm0, %v2923_v0 }
0x1402   : > { %2665 = vmatprep.subr.bf16.mxu1 %v2923_v0 }
0x1408   : > { %2656 = vmatmul.mubr.msk.bf16.vlgmr.msra.gmra.mxu1 %vm662_vm2, %v1972_v39 }
0x1409   : > { %2666 = vmatpush3.bf16.msra.mxu1 %v3336_v48  ;;  %2667 = vmatprep.mubr.msk.bf16.mxu1 %vm2924_vm0, %v2923_v0 }
0x140a   : > { %2679 = vmatprep.subr.bf16.mxu1 %v2923_v0 }
0x14c0   : > { %v1920_v58 = vpop.f32.mrf.mxu1 }
0x14c1   : > { %v1926_v40 = vpack.c.bf16 %v1920_v58, %v1920_v58 }
0x14c2   : > { %v2645_v41 = vpop.f32.mrf.mxu1 }
0x14c3   : > { %2650 = vmatmul.mubr.msk.bf16.vlgmr.msra.gmra.mxu0 %vm662_vm2, %v1926_v40 }
0x14c4   : > { %v1923_v42 = vpop.f32.mrf.mxu1  ;;  %2661 = vmatprep.mubr.msk.bf16.mxu0 %vm2924_vm0, %v2923_v0 }
0x14c6   : > { %v2646_v44 = vpop.f32.mrf.mxu1 }
0x14c8   : > { %v2015_v45 = vpop.f32.mrf.mxu1 }
0x14c9   : > { %v2021_v47 = vsel %vm662_vm2, %v2015_v45, -inf }
0x14ca   : > { %2022 = vmax.xlane.f32.xlu1 %v2021_v47  ;;  %v2657_v48 = vpop.f32.mrf.mxu1 }
0x14cc   : > { %v2018_v49 = vpop.f32.mrf.mxu1 }
0x14ce   : > { %v2658_v51 = vpop.f32.mrf.mxu1 }
0x1553   : > { %v2023_v52 = vpop.xlane.xlu1 %2022 }
0x1554   : > { %v2024_v53 = vsub.f32 %v2015_v45, %v2023_v52 }
0x1556   : > { %v2025_v56 = vmul.f32 1.442695, %v2024_v53 }
0x1558   : > { %2787 = vpow2.f32 %v2025_v56 }
0x1565   : > { %v2788_v59 = vpop.eup %2787 }
0x1566   : > { %v2027_v60 = vsel %vm662_vm2, %v2788_v59, 0.0 }
0x1567   : > { %2028 = vadd.xlane.f32.xlu0 %v2027_v60 }
0x157d   : > { %2033 = vrot.lane.b32.xlu0 %v3495_v3, %s3687_s20 }
0x1583   : > { %v1964_v61 = vpop.f32.mrf.mxu0 }
0x1584   : > { %v1970_v1 = vadd.f32 %v1964_v61, %v1811_v4 }
0x1585   : > { %v2651_v11 = vpop.f32.mrf.mxu0 }
0x1587   : > { %v1967_v12 = vpop.f32.mrf.mxu0 }
0x1589   : > { %v2652_v63 = vpop.f32.mrf.mxu0 }
0x15f0   : > { %v2029_v5 = vpop.xlane.xlu0 %2028 }
0x15f1   : > { %2789 = vrcp.f32 %v2029_v5 }
0x15f4   : > { %v2034_v7 = vpop.permute.xlu0 %2033 }
0x15f5   : > { %v2039_v9 = vsel %vm727_vm3, %v2034_v7, 0 }
0x15f6   : > { %2660 = vmatpush3.bf16.msra.mxu0 %v2039_v9 }
0x15f7   : > { %2671 = vmatprep.subr.bf16.mxu0 %v2923_v0 }
0x15fe   : > { %v2790_v10 = vpop.eup %2789 }
0x15ff   : > { %v2031_v13 = vmul.f32 %v2790_v10, %v2788_v59 }
0x1601   : > { %v2032_v6 = vpack.c.bf16 %v2031_v13, %v2031_v13 }
0x1603   : > { %2662 = vmatmul.mubr.msk.bf16.vlgmr.msra.gmra.mxu0 %vm662_vm2, %v2032_v6 }
0x1604   : > { %2672 = vmatpush3.bf16.msra.mxu0 %v3361_v8  ;;  %2675 = vmatprep.mubr.msk.bf16.mxu0 %vm2924_vm0, %v2923_v0 }
0x1605   : > { %2673 = vmatprep.subr.bf16.mxu0 %v2923_v0 }
0x1608   : > { %2674 = vmatpush3.bf16.msra.mxu0 %v3370_v50 }
0x16c3   : > { %v2075_v3 = vpop.f32.mrf.mxu0 }
0x16c4   : > { %v2081_v4 = vpack.c.bf16 %v2075_v3, %v2075_v3 }
0x16c5   : > { %v2663_v17 = vpop.f32.mrf.mxu0 }
0x16c6   : > { %2668 = vmatmul.mubr.msk.bf16.vlgmr.msra.gmra.mxu1 %vm662_vm2, %v2081_v4 }
0x16c7   : > { %v2078_v18 = vpop.f32.mrf.mxu0  ;;  %2680 = vmatpush3.bf16.msra.mxu1 %v3384_v55  ;;  %2687 = vmatprep.mubr.msk.bf16.mxu1 %vm2924_vm0, %v2923_v0 }
0x16c8   : > { %2681 = vmatprep.subr.bf16.mxu1 %v2923_v0 }
0x16c9   : > { %v2664_v8 = vpop.f32.mrf.mxu0 }
0x16cb   : > { %2682 = vmatpush3.bf16.msra.mxu1 %v3390_v57 }
0x16cc   : > { %2683 = vmatprep.subr.bf16.mxu1 %v2923_v0 }
0x16cf   : > { %2684 = vmatpush3.bf16.msra.mxu1 %v3420_v14 }
0x16d0   : > { %2685 = vmatprep.subr.bf16.mxu1 %v2923_v0 }
0x16d3   : > { %2686 = vmatpush3.bf16.msra.mxu1 %v3430_v15 }
0x1786   : > { %v2119_v50 = vpop.f32.mrf.mxu1 }
0x1787   : > { %v2125_v19 = vadd.f32 %v2119_v50, %v1970_v1 }
0x1788   : > { %v2669_v21 = vpop.f32.mrf.mxu1 }
0x1789   : > { %v2126_v55 = vadd.f32 %v3349_v32, %v2125_v19 }
0x178a   : > { %v2122_v22 = vpop.f32.mrf.mxu1 }
0x178b   : > { %v2127_v54 = vadd.f32 %v2126_v55, %v3463_v46 }
0x178c   : > { %v2670_v23 = vpop.f32.mrf.mxu1 }
0x178d   : > { %v2128_v24 = vsel %vm562_vm1, %v2127_v54, 0.0 }
0x178e   : > { %2129 = vadd.xlane.f32.xlu1 %v2128_v24 }
0x1817   : > { %v2130_v57 = vpop.xlane.xlu1 %2129 }
0x1818   : > { %v2131_v26 = vmul.f32 0.03125, %v2130_v57 }
0x181a   : > { %v2132_v27 = vsub.f32 %v2127_v54, %v2131_v26 }
0x181c   : > { %v2133_v14 = vmul.f32 %v2132_v27, %v2132_v27 }
0x181e   : > { %v2134_v0 = vsel %vm562_vm1, %v2133_v14, 0.0 }
0x181f   : > { %2135 = vadd.xlane.f32.xlu1 %v2134_v0 }
0x18a8   : > { %v2136_v15 = vpop.xlane.xlu1 %2135 }
0x18a9   : > { %v2137_v28 = vmul.f32 0.03125, %v2136_v15 }
0x18ab   : > { %v2138_v29 = vadd.f32 1e-05, %v2137_v28 }
0x18ad   : > { %2791 = vrsqrt.f32 %v2138_v29 }
0x18ba   : > { %v2792_v30 = vpop.eup %2791 }
0x18bb   : > { %v2140_v32 = vmul.f32 %v2792_v30, %v2132_v27 }
0x18bd   : > { %v2141_v31 = vmul.f32 %v3398_v62, %v2140_v32 }
0x18bf   : > { %v2142_v46 = vadd.f32 %v3403_v2, %v2141_v31 }
0x18c1   : > { %v2143_v33 = vpack.c.bf16 %v2142_v46, %v2142_v46 }
0x18c3   : > { %2676 = vmatmul.mubr.msk.bf16.vlgmr.msra.gmra.mxu0 %vm562_vm1, %v2143_v33 }
0x1983   : > { %v2181_v34 = vpop.f32.mrf.mxu0 }
0x1984   : > { %v2182_v35 = vadd.f32 %v3437_v16, %v2181_v34 }
0x1985   : > { %v2677_v36 = vpop.f32.mrf.mxu0 }
0x1986   : > { %v2187_v37 = vmax.f32 %v2182_v35, 0.0 }
0x1987   : > { %v2184_v38 = vpop.f32.mrf.mxu0 }
0x1988   : > { %v2188_v39 = vpack.c.bf16 %v2187_v37, %v2187_v37 }
0x1989   : > { %v2678_v58 = vpop.f32.mrf.mxu0 }
0x198a   : > { %2688 = vmatmul.mubr.msk.bf16.vlgmr.msra.gmra.mxu1 %vm1389_vm4, %v2188_v39 }
0x1a4a   : > { %v2226_v40 = vpop.f32.mrf.mxu1 }
0x1a4b   : > { %v2227_v41 = vadd.f32 %v3446_v25, %v2226_v40 }
0x1a4c   : > { %v2689_v42 = vpop.f32.mrf.mxu1 }
0x1a4d   : > { %v2232_v62 = vadd.f32 %v2227_v41, %v2142_v46 }
0x1a4e   : > { %v2229_v44 = vpop.f32.mrf.mxu1 }
0x1a4f   : > { %v2233_v2 = vsel %vm562_vm1, %v2232_v62, 0.0 }
0x1a50   : > { %2234 = vadd.xlane.f32.xlu1 %v2233_v2  ;;  %v2690_v45 = vpop.f32.mrf.mxu1 }
0x1ad9   : > { %v2235_v16 = vpop.xlane.xlu1 %2234 }
0x1ada   : > { %v2236_v47 = vmul.f32 0.03125, %v2235_v16 }
0x1adc   : > { %v2237_v48 = vsub.f32 %v2232_v62, %v2236_v47 }
0x1ade   : > { %v2238_v49 = vmul.f32 %v2237_v48, %v2237_v48 }
0x1ae0   : > { %v2239_v51 = vsel %vm562_vm1, %v2238_v49, 0.0 }
0x1ae1   : > { %2240 = vadd.xlane.f32.xlu1 %v2239_v51 }
0x1b6a   : > { %v2241_v52 = vpop.xlane.xlu1 %2240 }
0x1b6b   : > { %v2242_v53 = vmul.f32 0.03125, %v2241_v52 }
0x1b6d   : > { %v2243_v25 = vadd.f32 1e-05, %v2242_v53 }
0x1b6f   : > { %2793 = vrsqrt.f32 %v2243_v25 }
0x1b7c   : > { %v2794_v56 = vpop.eup %2793 }
0x1b7d   : > { %v2245_v59 = vmul.f32 %v2794_v56, %v2237_v48 }
0x1b7f   : > { %v2246_v60 = vmul.f32 %v3454_v43, %v2245_v59 }
0x1b81   : > { %v2247_v61 = vadd.f32 %v3459_v20, %v2246_v60 }
0x1b83   : > { %2248 = vst.msk [vmem:[%s519_s27] sm:$0xff] %vm562_vm1, %v2247_v61 }
0x1b84   : > { %2864 = shalt.err (!%p2861_p5)
}
0x1b85   : > { %s2865_s29 = scalar_lea.hbm %s2261_s14, 128  ;;  %s2869_s18 = scalar_lea.hbm %s3689_s24, 256 }
0x1b86   : > { %p2866_p9 = scmp.ne.s32.totalorder %s2261_s14, %s2865_s29  ;;  %p2870_p12 = scmp.lt.s32.totalorder %s2261_s14, %s3689_s24 }
0x1b87   : > { %p2871_p1 = scmp.lt.s32.totalorder %s2869_s18, %s2865_s29 }
0x1b88   : > { %p2867_p0 = pnand %p2866_p9, %p3690_p3 }
0x1b89   : > { %p2872_p6 = por %p2871_p1, %p2870_p12 }
0x1b8a   : > { %p2868_p11 = pneg %p2867_p0 }
0x1b8c   : > { %p2873_p13 = pnand %p2872_p6, %p2868_p11 }
0x1b8e   : > { %2876 = shalt.err (!%p2873_p13)
}
0x1b8f   : > { %2695 = dma.vmem_to_hbm [thread:$0]  (%p3690_p3), %s2264_s0, 128, %s2261_s14, %s2250_s15  }
0x1b90 PF: > { %s3691_s25 = sld [smem:[#allocation11_spill]]  ;;  %p3694_p8 = scmp.ge.s32.totalorder %s2919_s16, 2 }
0x1b91   : > { %s3692_s26 = sld [smem:[#allocation16_spill]] }
0x1b96   : > { %s2275_s17 = sand.u32 1, %s3691_s25  }
0x1b97   : > { %p3693_p7 = scmp.ne.s32.totalorder %s3692_s26, 0  ;;  %s2276_s21 = scalar_lea.sflag [#allocation4], %s2275_s17 }
0x1b99   : > { %p2705_p10 = pnand %p3694_p8, %p3693_p7 }
0x1b9b   : > { %p2706_p2 = pneg %p2705_p10 }
0x1b9d   : > { %2902 = dma.done.wait (%p2706_p2), %s2276_s21, 128  }
0x1b9e   : > { %2904 = vsyncadd (%p2706_p2), %s2276_s21, 4294967168  ;;  %s3695_s16 = sld [smem:[#allocation13_spill]]  ;;  %s3698_s29 = smov %s2911_s30 }
0x1b9f   : > { %s3696_s23 = sld [smem:[#allocation12_spill]] }
0x1ba0   : > { %s3697_s15 = sld [smem:[#allocation14_spill]] }
0x1ba4   : > { %p30_p4 = scmp.ge.s32.totalorder %s3695_s16, 4  }
0x1ba5   : > { %s3699_s30 = smov %s3696_s23 }
0x1ba6   :  { %32 = sbr.rel (!%p30_p4) target bundleno = 10 (0xa), region = 134 }
0x1bab   :  { %2281 = vsyncpa [#allocation3], 1 }
0x1bac   :  { %2283 = vsyncpa [#allocation3 + $0x1], 1 }
0x1bad   :  { %2284 = vsyncpa [#allocation6], 1 }
0x1bae   :  { %2286 = vsyncpa [#allocation6 + $0x1], 1 }
0x1baf   :  { %2287 = vsyncpa [#allocation4], 1 }
0x1bb0   :  { %2289 = vsyncpa [#allocation4 + $0x1], 1 }

</bundles_post_ra>
